<compile_context>
chip_gen: v7x
topology: tpu7x:2x2x1
jax: 0.10.0
libtpu: 0.0.40
codegen_flags: <defaults>
</compile_context>

<pallas_src>
import jax
import jax.numpy as jnp
from jax.experimental import pallas as pl
from jax.experimental.pallas import tpu as pltpu


def bottle_kernel(x_ref, w1f_ref, w2_ref, b2_ref, w3_ref, b3_ref, o_ref):
    """One batch element per grid step.

    x_ref  : (1, Hp*Wp, Cin_p)  bf16  spatially padded input (1-pixel halo,
                                      W rounded up to a multiple of 8), with
                                      channel `Cin` holding the interior
                                      indicator (1 inside image, 0 in halo).
    w1f_ref: (Cin_p, Cmid_p+Cout_p) bf16  [conv1*bn1 | convfix*bnfix]; the
                                          biases sit in the indicator row.
    w2_ref : (9, Cmid_p, Cmid_p) bf16     BN-scaled 3x3 taps (ky*3+kx, cin, cout).
    b2_ref : (1, Cmid_p) f32
    w3_ref : (Cmid_p, Cout_p) bf16        BN-scaled.
    b3_ref : (1, Cout_p) f32
    o_ref  : (1, H, W, Cout_p) f32
    """
    _, S_all, _ = x_ref.shape
    _, H, W, Cout_p = o_ref.shape
    Cmid_p = b2_ref.shape[1]
    Hp = H + 2
    Wp = S_all // Hp
    S = H * W

    xf = x_ref[0]                                        # (Hp*Wp, Cin_p) bf16

    # ---- conv1 (1x1) + bn1  and  channelfix shortcut, fused in one MXU pass --
    z = jnp.dot(xf, w1f_ref[...], preferred_element_type=jnp.float32)
    y1 = jnp.maximum(z[:, :Cmid_p], 0.0)     # relu(conv1 + b1); halo rows stay 0
    sc = z[:, Cmid_p:]                       # convfix + bfix (halo rows unused)

    # ---- conv2 (3x3, padding=1) + bn2 + relu ---------------------------------
    y1 = y1.reshape(Hp, Wp, Cmid_p)          # Wp % 8 == 0 -> free relayout
    acc = jnp.zeros((S, Cmid_p), jnp.float32)
    for kx in range(3):
        # one W-shifted copy per kx (sublane shift), reused by all three ky taps
        ykx = y1[:, kx:kx + W, :].astype(jnp.bfloat16)       # (Hp, W, Cmid_p)
        for ky in range(3):
            win = ykx[ky:ky + H].reshape(S, Cmid_p)          # leading-axis slice
            acc = acc + jnp.dot(win, w2_ref[ky * 3 + kx],
                                preferred_element_type=jnp.float32)
    y2 = jnp.maximum(acc + b2_ref[...], 0.0).astype(jnp.bfloat16)

    # ---- conv3 (1x1) + bn3 ----------------------------------------------------
    y3 = jnp.dot(y2, w3_ref[...], preferred_element_type=jnp.float32) + b3_ref[...]

    # ---- residual add + relu (extract shortcut interior once) ----------------
    sc_in = sc.reshape(Hp, Wp, Cout_p)[1:1 + H, 1:1 + W, :].reshape(S, Cout_p)
    out = jnp.maximum(y3 + sc_in, 0.0)
    o_ref[0] = out.reshape(H, W, Cout_p)


def _round_up(n, m):
    return (n + m - 1) // m * m


def bottle_forward(x_nchw, params):
    """x_nchw: (B, Cin, H, W) float32.  Returns (B, Cout, H, W) float32."""
    (w1, s1, b1, w2, s2, b2, w3, s3, b3, wfix, sfix, bfix) = params
    B, Cin, H, W = x_nchw.shape
    Cmid = w1.shape[1]
    Cout = w3.shape[1]

    LANE = 128
    Cin_p = _round_up(Cin + 1, LANE)       # +1 for the indicator/bias channel
    Cmid_p = _round_up(Cmid, LANE)
    Cout_p = _round_up(Cout, LANE)
    Hp = H + 2                             # 1-pixel halo for the 3x3 conv
    Wp = _round_up(W + 2, 8)               # halo + sublane alignment

    # ---- fold BN scales into the conv weights (biases stay additive) --------
    w1s = w1 * s1                          # (Cin, Cmid)
    wfs = wfix * sfix                      # (Cin, Cout)
    w2s = w2 * s2.reshape(1, 1, Cmid)      # (9, Cmid, Cmid), scales output chans
    w3s = w3 * s3                          # (Cmid, Cout)

    # conv1 + channelfix fused; their biases live in the indicator row (Cin).
    w1f = jnp.zeros((Cin_p, Cmid_p + Cout_p), jnp.float32)
    w1f = w1f.at[:Cin, :Cmid].set(w1s)
    w1f = w1f.at[Cin, :Cmid].set(b1[0])
    w1f = w1f.at[:Cin, Cmid_p:Cmid_p + Cout].set(wfs)
    w1f = w1f.at[Cin, Cmid_p:Cmid_p + Cout].set(bfix[0])
    w1f = w1f.astype(jnp.bfloat16)

    w2p = jnp.zeros((9, Cmid_p, Cmid_p), jnp.float32).at[:, :Cmid, :Cmid].set(w2s)
    w2p = w2p.astype(jnp.bfloat16)
    w3p = jnp.zeros((Cmid_p, Cout_p), jnp.float32).at[:Cmid, :Cout].set(w3s)
    w3p = w3p.astype(jnp.bfloat16)
    b2p = jnp.zeros((1, Cmid_p), jnp.float32).at[:, :Cmid].set(b2)
    b3p = jnp.zeros((1, Cout_p), jnp.float32).at[:, :Cout].set(b3)

    # ---- NCHW -> NHWC, indicator channel, halo + lane padding, flatten ------
    x = jnp.transpose(x_nchw, (0, 2, 3, 1))                    # (B, H, W, Cin)
    ind = jnp.ones((B, H, W, 1), x.dtype)
    x = jnp.concatenate([x, ind], axis=-1)                     # (B, H, W, Cin+1)
    xp = jnp.pad(x, ((0, 0), (1, 1), (1, Wp - W - 1), (0, Cin_p - Cin - 1)))
    xp = xp.astype(jnp.bfloat16).reshape(B, Hp * Wp, Cin_p)

    out_p = pl.pallas_call(
        bottle_kernel,
        out_shape=jax.ShapeDtypeStruct((B, H, W, Cout_p), jnp.float32),
        grid=(B,),
        in_specs=[
            pl.BlockSpec((1, Hp * Wp, Cin_p), lambda b: (b, 0, 0)),
            pl.BlockSpec((Cin_p, Cmid_p + Cout_p), lambda b: (0, 0)),
            pl.BlockSpec((9, Cmid_p, Cmid_p), lambda b: (0, 0, 0)),
            pl.BlockSpec((1, Cmid_p), lambda b: (0, 0)),
            pl.BlockSpec((Cmid_p, Cout_p), lambda b: (0, 0)),
            pl.BlockSpec((1, Cout_p), lambda b: (0, 0)),
        ],
        out_specs=pl.BlockSpec((1, H, W, Cout_p), lambda b: (b, 0, 0, 0)),
        compiler_params=pltpu.CompilerParams(
            dimension_semantics=("parallel",)),
    )(xp, w1f, w2p, b2p, w3p, b3p)

    return jnp.transpose(out_p[..., :Cout], (0, 3, 1, 2))       # -> NCHW


# --------------------------- reference (pure JAX, f32) ----------------------

def ref_forward(x_nchw, params):
    (w1, s1, b1, w2, s2, b2, w3, s3, b3, wfix, sfix, bfix) = params
    x = jnp.transpose(x_nchw, (0, 2, 3, 1))
    B, H, W, _ = x.shape

    def conv1x1(t, w):
        return jnp.einsum('bhwc,cd->bhwd', t, w)

    def conv3x3(t, w_taps):
        tp = jnp.pad(t, ((0, 0), (1, 1), (1, 1), (0, 0)))
        out = 0.0
        for ky in range(3):
            for kx in range(3):
                out = out + jnp.einsum('bhwc,cd->bhwd',
                                       tp[:, ky:ky + H, kx:kx + W, :],
                                       w_taps[ky * 3 + kx])
        return out

    y = jnp.maximum(conv1x1(x, w1) * s1 + b1, 0.0)
    y = jnp.maximum(conv3x3(y, w2) * s2 + b2, 0.0)
    y = conv1x1(y, w3) * s3 + b3
    sc = conv1x1(x, wfix) * sfix + bfix
    out = jnp.maximum(y + sc, 0.0)
    return jnp.transpose(out, (0, 3, 1, 2))


# ----------------------------- parameter setup ------------------------------

def fold_bn(key, ch):
    kg, kb, km, kv = jax.random.split(key, 4)
    gamma = 1.0 + 0.1 * jax.random.normal(kg, (ch,), jnp.float32)
    beta = 0.1 * jax.random.normal(kb, (ch,), jnp.float32)
    mean = 0.1 * jax.random.normal(km, (ch,), jnp.float32)
    var = 1.0 + 0.1 * jnp.abs(jax.random.normal(kv, (ch,), jnp.float32))
    scale = gamma / jnp.sqrt(var + 1e-5)
    bias = beta - mean * scale
    return scale.reshape(1, ch), bias.reshape(1, ch)


def make_params(key, cin, cmid, cout):
    ks = jax.random.split(key, 8)
    # conv weights stored as (Cin, Cout) [1x1] and (9, Cin, Cout) [3x3 taps]
    w1 = jax.random.normal(ks[0], (cin, cmid), jnp.float32) * (cin ** -0.5)
    w2 = jax.random.normal(ks[1], (9, cmid, cmid), jnp.float32) * ((9 * cmid) ** -0.5)
    w3 = jax.random.normal(ks[2], (cmid, cout), jnp.float32) * (cmid ** -0.5)
    wfix = jax.random.normal(ks[3], (cin, cout), jnp.float32) * (cin ** -0.5)
    s1, b1 = fold_bn(ks[4], cmid)
    s2, b2 = fold_bn(ks[5], cmid)
    s3, b3 = fold_bn(ks[6], cout)
    sfix, bfix = fold_bn(ks[7], cout)
    return (w1, s1, b1, w2, s2, b2, w3, s3, b3, wfix, sfix, bfix)


if __name__ == "__main__":
    B, Cin, Cmid, Cout, H, W = 2, 4, 8, 16, 16, 16

    key = jax.random.PRNGKey(0)
    kx_, kp = jax.random.split(key)
    x = jax.random.normal(kx_, (B, Cin, H, W), jnp.float32)   # NCHW like PyTorch
    params = make_params(kp, Cin, Cmid, Cout)

    out = jax.jit(bottle_forward)(x, params)
    out = jax.block_until_ready(out)

    ref = ref_forward(x, params)
    assert out.shape == (B, Cout, H, W)
    # bf16 matmul operands with f32 accumulation -> relaxed tolerance vs f32 ref
    assert jnp.allclose(out, ref, rtol=5e-2, atol=5e-2), (
        f"mismatch vs JAX reference (max abs err {jnp.max(jnp.abs(out - ref))})")

    print("KERNEL_OK")
</pallas_src>

<mosaic_0001>
module attributes {stable_mosaic.version = 11 : i64} {
  func.func @bottle_kernel(%arg0: i32, %arg1: memref<1x432x128xbf16, #tpu.memory_space<vmem>>, %arg2: memref<128x256xbf16, #tpu.memory_space<vmem>>, %arg3: memref<9x128x128xbf16, #tpu.memory_space<vmem>>, %arg4: memref<1x128xf32, #tpu.memory_space<vmem>>, %arg5: memref<128x128xbf16, #tpu.memory_space<vmem>>, %arg6: memref<1x128xf32, #tpu.memory_space<vmem>>, %arg7: memref<1x16x16x128xf32, #tpu.memory_space<vmem>>) attributes {dimension_semantics = [#tpu.dimension_semantics<parallel>], iteration_bounds = array<i64: 2>, scalar_prefetch = 0 : i64, scratch_operands = 0 : i64, tpu.core_type = #tpu.core_type<tc>, window_params = [{transform_indices = @transform_0, window_bounds = array<i64: 1, 432, 128>}, {pipeline_mode = #tpu.pipeline_mode<synchronous>, transform_indices = @transform_1, window_bounds = array<i64: 128, 256>}, {pipeline_mode = #tpu.pipeline_mode<synchronous>, transform_indices = @transform_2, window_bounds = array<i64: 9, 128, 128>}, {pipeline_mode = #tpu.pipeline_mode<synchronous>, transform_indices = @transform_3, window_bounds = array<i64: 1, 128>}, {pipeline_mode = #tpu.pipeline_mode<synchronous>, transform_indices = @transform_4, window_bounds = array<i64: 128, 128>}, {pipeline_mode = #tpu.pipeline_mode<synchronous>, transform_indices = @transform_5, window_bounds = array<i64: 1, 128>}, {transform_indices = @transform_6, window_bounds = array<i64: 1, 16, 16, 128>}]} {
    %c0 = arith.constant 0 : index
    %c0_0 = arith.constant 0 : index
    %c0_1 = arith.constant 0 : index
    %0 = vector.load %arg1[%c0, %c0_0, %c0_1] : memref<1x432x128xbf16, #tpu.memory_space<vmem>>, vector<1x432x128xbf16>
    %1 = vector.shape_cast %0 : vector<1x432x128xbf16> to vector<432x128xbf16>
    %c0_2 = arith.constant 0 : index
    %c0_3 = arith.constant 0 : index
    %2 = vector.load %arg2[%c0_2, %c0_3] : memref<128x256xbf16, #tpu.memory_space<vmem>>, vector<128x256xbf16>
    %cst = arith.constant dense<0.000000e+00> : vector<432x256xf32>
    %3 = tpu.matmul %1, %2, %cst {dimension_numbers = #tpu.dot_dimension_numbers<[1], [0], [0], [1], [0, 0, 1, 1], [], []>} : vector<432x128xbf16>, vector<128x256xbf16>, vector<432x256xf32> -> vector<432x256xf32>
    %4 = vector.extract_strided_slice %3 {offsets = [0, 0], sizes = [432, 128], strides = [1, 1]} : vector<432x256xf32> to vector<432x128xf32>
    %cst_4 = arith.constant 0.000000e+00 : f32
    %5 = vector.broadcast %cst_4 : f32 to vector<432x128xf32>
    %6 = arith.maximumf %4, %5 : vector<432x128xf32>
    %7 = vector.extract_strided_slice %3 {offsets = [0, 128], sizes = [432, 128], strides = [1, 1]} : vector<432x256xf32> to vector<432x128xf32>
    %8 = vector.shape_cast %6 : vector<432x128xf32> to vector<18x24x128xf32>
    %cst_5 = arith.constant 0.000000e+00 : f32
    %9 = vector.broadcast %cst_5 : f32 to vector<256x128xf32>
    %10 = vector.extract_strided_slice %8 {offsets = [0, 0, 0], sizes = [18, 16, 128], strides = [1, 1, 1]} : vector<18x24x128xf32> to vector<18x16x128xf32>
    %11 = arith.truncf %10 : vector<18x16x128xf32> to vector<18x16x128xbf16>
    %12 = vector.extract_strided_slice %11 {offsets = [0, 0, 0], sizes = [16, 16, 128], strides = [1, 1, 1]} : vector<18x16x128xbf16> to vector<16x16x128xbf16>
    %13 = vector.shape_cast %12 : vector<16x16x128xbf16> to vector<256x128xbf16>
    %c0_6 = arith.constant 0 : index
    %c0_7 = arith.constant 0 : index
    %c0_8 = arith.constant 0 : index
    %14 = vector.load %arg3[%c0_6, %c0_7, %c0_8] : memref<9x128x128xbf16, #tpu.memory_space<vmem>>, vector<1x128x128xbf16>
    %15 = vector.shape_cast %14 : vector<1x128x128xbf16> to vector<128x128xbf16>
    %cst_9 = arith.constant dense<0.000000e+00> : vector<256x128xf32>
    %16 = tpu.matmul %13, %15, %cst_9 {dimension_numbers = #tpu.dot_dimension_numbers<[1], [0], [0], [1], [0, 0, 1, 1], [], []>} : vector<256x128xbf16>, vector<128x128xbf16>, vector<256x128xf32> -> vector<256x128xf32>
    %17 = arith.addf %9, %16 : vector<256x128xf32>
    %18 = vector.extract_strided_slice %11 {offsets = [1, 0, 0], sizes = [16, 16, 128], strides = [1, 1, 1]} : vector<18x16x128xbf16> to vector<16x16x128xbf16>
    %19 = vector.shape_cast %18 : vector<16x16x128xbf16> to vector<256x128xbf16>
    %c3 = arith.constant 3 : index
    %c0_10 = arith.constant 0 : index
    %c0_11 = arith.constant 0 : index
    %20 = vector.load %arg3[%c3, %c0_10, %c0_11] : memref<9x128x128xbf16, #tpu.memory_space<vmem>>, vector<1x128x128xbf16>
    %21 = vector.shape_cast %20 : vector<1x128x128xbf16> to vector<128x128xbf16>
    %cst_12 = arith.constant dense<0.000000e+00> : vector<256x128xf32>
    %22 = tpu.matmul %19, %21, %cst_12 {dimension_numbers = #tpu.dot_dimension_numbers<[1], [0], [0], [1], [0, 0, 1, 1], [], []>} : vector<256x128xbf16>, vector<128x128xbf16>, vector<256x128xf32> -> vector<256x128xf32>
    %23 = arith.addf %17, %22 : vector<256x128xf32>
    %24 = vector.extract_strided_slice %11 {offsets = [2, 0, 0], sizes = [16, 16, 128], strides = [1, 1, 1]} : vector<18x16x128xbf16> to vector<16x16x128xbf16>
    %25 = vector.shape_cast %24 : vector<16x16x128xbf16> to vector<256x128xbf16>
    %c6 = arith.constant 6 : index
    %c0_13 = arith.constant 0 : index
    %c0_14 = arith.constant 0 : index
    %26 = vector.load %arg3[%c6, %c0_13, %c0_14] : memref<9x128x128xbf16, #tpu.memory_space<vmem>>, vector<1x128x128xbf16>
    %27 = vector.shape_cast %26 : vector<1x128x128xbf16> to vector<128x128xbf16>
    %cst_15 = arith.constant dense<0.000000e+00> : vector<256x128xf32>
    %28 = tpu.matmul %25, %27, %cst_15 {dimension_numbers = #tpu.dot_dimension_numbers<[1], [0], [0], [1], [0, 0, 1, 1], [], []>} : vector<256x128xbf16>, vector<128x128xbf16>, vector<256x128xf32> -> vector<256x128xf32>
    %29 = arith.addf %23, %28 : vector<256x128xf32>
    %30 = vector.extract_strided_slice %8 {offsets = [0, 1, 0], sizes = [18, 16, 128], strides = [1, 1, 1]} : vector<18x24x128xf32> to vector<18x16x128xf32>
    %31 = arith.truncf %30 : vector<18x16x128xf32> to vector<18x16x128xbf16>
    %32 = vector.extract_strided_slice %31 {offsets = [0, 0, 0], sizes = [16, 16, 128], strides = [1, 1, 1]} : vector<18x16x128xbf16> to vector<16x16x128xbf16>
    %33 = vector.shape_cast %32 : vector<16x16x128xbf16> to vector<256x128xbf16>
    %c1 = arith.constant 1 : index
    %c0_16 = arith.constant 0 : index
    %c0_17 = arith.constant 0 : index
    %34 = vector.load %arg3[%c1, %c0_16, %c0_17] : memref<9x128x128xbf16, #tpu.memory_space<vmem>>, vector<1x128x128xbf16>
    %35 = vector.shape_cast %34 : vector<1x128x128xbf16> to vector<128x128xbf16>
    %cst_18 = arith.constant dense<0.000000e+00> : vector<256x128xf32>
    %36 = tpu.matmul %33, %35, %cst_18 {dimension_numbers = #tpu.dot_dimension_numbers<[1], [0], [0], [1], [0, 0, 1, 1], [], []>} : vector<256x128xbf16>, vector<128x128xbf16>, vector<256x128xf32> -> vector<256x128xf32>
    %37 = arith.addf %29, %36 : vector<256x128xf32>
    %38 = vector.extract_strided_slice %31 {offsets = [1, 0, 0], sizes = [16, 16, 128], strides = [1, 1, 1]} : vector<18x16x128xbf16> to vector<16x16x128xbf16>
    %39 = vector.shape_cast %38 : vector<16x16x128xbf16> to vector<256x128xbf16>
    %c4 = arith.constant 4 : index
    %c0_19 = arith.constant 0 : index
    %c0_20 = arith.constant 0 : index
    %40 = vector.load %arg3[%c4, %c0_19, %c0_20] : memref<9x128x128xbf16, #tpu.memory_space<vmem>>, vector<1x128x128xbf16>
    %41 = vector.shape_cast %40 : vector<1x128x128xbf16> to vector<128x128xbf16>
    %cst_21 = arith.constant dense<0.000000e+00> : vector<256x128xf32>
    %42 = tpu.matmul %39, %41, %cst_21 {dimension_numbers = #tpu.dot_dimension_numbers<[1], [0], [0], [1], [0, 0, 1, 1], [], []>} : vector<256x128xbf16>, vector<128x128xbf16>, vector<256x128xf32> -> vector<256x128xf32>
    %43 = arith.addf %37, %42 : vector<256x128xf32>
    %44 = vector.extract_strided_slice %31 {offsets = [2, 0, 0], sizes = [16, 16, 128], strides = [1, 1, 1]} : vector<18x16x128xbf16> to vector<16x16x128xbf16>
    %45 = vector.shape_cast %44 : vector<16x16x128xbf16> to vector<256x128xbf16>
    %c7 = arith.constant 7 : index
    %c0_22 = arith.constant 0 : index
    %c0_23 = arith.constant 0 : index
    %46 = vector.load %arg3[%c7, %c0_22, %c0_23] : memref<9x128x128xbf16, #tpu.memory_space<vmem>>, vector<1x128x128xbf16>
    %47 = vector.shape_cast %46 : vector<1x128x128xbf16> to vector<128x128xbf16>
    %cst_24 = arith.constant dense<0.000000e+00> : vector<256x128xf32>
    %48 = tpu.matmul %45, %47, %cst_24 {dimension_numbers = #tpu.dot_dimension_numbers<[1], [0], [0], [1], [0, 0, 1, 1], [], []>} : vector<256x128xbf16>, vector<128x128xbf16>, vector<256x128xf32> -> vector<256x128xf32>
    %49 = arith.addf %43, %48 : vector<256x128xf32>
    %50 = vector.extract_strided_slice %8 {offsets = [0, 2, 0], sizes = [18, 16, 128], strides = [1, 1, 1]} : vector<18x24x128xf32> to vector<18x16x128xf32>
    %51 = arith.truncf %50 : vector<18x16x128xf32> to vector<18x16x128xbf16>
    %52 = vector.extract_strided_slice %51 {offsets = [0, 0, 0], sizes = [16, 16, 128], strides = [1, 1, 1]} : vector<18x16x128xbf16> to vector<16x16x128xbf16>
    %53 = vector.shape_cast %52 : vector<16x16x128xbf16> to vector<256x128xbf16>
    %c2 = arith.constant 2 : index
    %c0_25 = arith.constant 0 : index
    %c0_26 = arith.constant 0 : index
    %54 = vector.load %arg3[%c2, %c0_25, %c0_26] : memref<9x128x128xbf16, #tpu.memory_space<vmem>>, vector<1x128x128xbf16>
    %55 = vector.shape_cast %54 : vector<1x128x128xbf16> to vector<128x128xbf16>
    %cst_27 = arith.constant dense<0.000000e+00> : vector<256x128xf32>
    %56 = tpu.matmul %53, %55, %cst_27 {dimension_numbers = #tpu.dot_dimension_numbers<[1], [0], [0], [1], [0, 0, 1, 1], [], []>} : vector<256x128xbf16>, vector<128x128xbf16>, vector<256x128xf32> -> vector<256x128xf32>
    %57 = arith.addf %49, %56 : vector<256x128xf32>
    %58 = vector.extract_strided_slice %51 {offsets = [1, 0, 0], sizes = [16, 16, 128], strides = [1, 1, 1]} : vector<18x16x128xbf16> to vector<16x16x128xbf16>
    %59 = vector.shape_cast %58 : vector<16x16x128xbf16> to vector<256x128xbf16>
    %c5 = arith.constant 5 : index
    %c0_28 = arith.constant 0 : index
    %c0_29 = arith.constant 0 : index
    %60 = vector.load %arg3[%c5, %c0_28, %c0_29] : memref<9x128x128xbf16, #tpu.memory_space<vmem>>, vector<1x128x128xbf16>
    %61 = vector.shape_cast %60 : vector<1x128x128xbf16> to vector<128x128xbf16>
    %cst_30 = arith.constant dense<0.000000e+00> : vector<256x128xf32>
    %62 = tpu.matmul %59, %61, %cst_30 {dimension_numbers = #tpu.dot_dimension_numbers<[1], [0], [0], [1], [0, 0, 1, 1], [], []>} : vector<256x128xbf16>, vector<128x128xbf16>, vector<256x128xf32> -> vector<256x128xf32>
    %63 = arith.addf %57, %62 : vector<256x128xf32>
    %64 = vector.extract_strided_slice %51 {offsets = [2, 0, 0], sizes = [16, 16, 128], strides = [1, 1, 1]} : vector<18x16x128xbf16> to vector<16x16x128xbf16>
    %65 = vector.shape_cast %64 : vector<16x16x128xbf16> to vector<256x128xbf16>
    %c8 = arith.constant 8 : index
    %c0_31 = arith.constant 0 : index
    %c0_32 = arith.constant 0 : index
    %66 = vector.load %arg3[%c8, %c0_31, %c0_32] : memref<9x128x128xbf16, #tpu.memory_space<vmem>>, vector<1x128x128xbf16>
    %67 = vector.shape_cast %66 : vector<1x128x128xbf16> to vector<128x128xbf16>
    %cst_33 = arith.constant dense<0.000000e+00> : vector<256x128xf32>
    %68 = tpu.matmul %65, %67, %cst_33 {dimension_numbers = #tpu.dot_dimension_numbers<[1], [0], [0], [1], [0, 0, 1, 1], [], []>} : vector<256x128xbf16>, vector<128x128xbf16>, vector<256x128xf32> -> vector<256x128xf32>
    %69 = arith.addf %63, %68 : vector<256x128xf32>
    %c0_34 = arith.constant 0 : index
    %c0_35 = arith.constant 0 : index
    %70 = vector.load %arg4[%c0_34, %c0_35] : memref<1x128xf32, #tpu.memory_space<vmem>>, vector<1x128xf32>
    %71 = vector.broadcast %70 : vector<1x128xf32> to vector<256x128xf32>
    %72 = arith.addf %69, %71 : vector<256x128xf32>
    %cst_36 = arith.constant 0.000000e+00 : f32
    %73 = vector.broadcast %cst_36 : f32 to vector<256x128xf32>
    %74 = arith.maximumf %72, %73 : vector<256x128xf32>
    %75 = arith.truncf %74 : vector<256x128xf32> to vector<256x128xbf16>
    %c0_37 = arith.constant 0 : index
    %c0_38 = arith.constant 0 : index
    %76 = vector.load %arg5[%c0_37, %c0_38] : memref<128x128xbf16, #tpu.memory_space<vmem>>, vector<128x128xbf16>
    %cst_39 = arith.constant dense<0.000000e+00> : vector<256x128xf32>
    %77 = tpu.matmul %75, %76, %cst_39 {dimension_numbers = #tpu.dot_dimension_numbers<[1], [0], [0], [1], [0, 0, 1, 1], [], []>} : vector<256x128xbf16>, vector<128x128xbf16>, vector<256x128xf32> -> vector<256x128xf32>
    %c0_40 = arith.constant 0 : index
    %c0_41 = arith.constant 0 : index
    %78 = vector.load %arg6[%c0_40, %c0_41] : memref<1x128xf32, #tpu.memory_space<vmem>>, vector<1x128xf32>
    %79 = vector.broadcast %78 : vector<1x128xf32> to vector<256x128xf32>
    %80 = arith.addf %77, %79 : vector<256x128xf32>
    %81 = vector.shape_cast %7 : vector<432x128xf32> to vector<18x24x128xf32>
    %82 = vector.extract_strided_slice %81 {offsets = [1, 1, 0], sizes = [16, 16, 128], strides = [1, 1, 1]} : vector<18x24x128xf32> to vector<16x16x128xf32>
    %83 = vector.shape_cast %82 : vector<16x16x128xf32> to vector<256x128xf32>
    %84 = arith.addf %80, %83 : vector<256x128xf32>
    %cst_42 = arith.constant 0.000000e+00 : f32
    %85 = vector.broadcast %cst_42 : f32 to vector<256x128xf32>
    %86 = arith.maximumf %84, %85 : vector<256x128xf32>
    %87 = vector.shape_cast %86 : vector<256x128xf32> to vector<16x16x128xf32>
    %c0_43 = arith.constant 0 : index
    %c0_44 = arith.constant 0 : index
    %c0_45 = arith.constant 0 : index
    %c0_46 = arith.constant 0 : index
    %88 = vector.load %arg7[%c0_43, %c0_44, %c0_45, %c0_46] : memref<1x16x16x128xf32, #tpu.memory_space<vmem>>, vector<1x16x16x128xf32>
    %89 = vector.shape_cast %88 : vector<1x16x16x128xf32> to vector<16x16x128xf32>
    %90 = vector.shape_cast %87 : vector<16x16x128xf32> to vector<1x16x16x128xf32>
    tpu.vector_store %arg7[%c0_43, %c0_44, %c0_45, %c0_46], %90 {strides = array<i32>} : memref<1x16x16x128xf32, #tpu.memory_space<vmem>>, vector<1x16x16x128xf32>,
    return
  }
  func.func @transform_0(%arg0: i32) -> (i32, i32, i32) {
    %c0_i32 = arith.constant 0 : i32
    %c0_i32_0 = arith.constant 0 : i32
    %c0_i32_1 = arith.constant 0 : i32
    return %arg0, %c0_i32, %c0_i32_0 : i32, i32, i32
  }
  func.func @transform_1(%arg0: i32) -> (i32, i32) {
    %c0_i32 = arith.constant 0 : i32
    %c0_i32_0 = arith.constant 0 : i32
    %c0_i32_1 = arith.constant 0 : i32
    return %c0_i32, %c0_i32_0 : i32, i32
  }
  func.func @transform_2(%arg0: i32) -> (i32, i32, i32) {
    %c0_i32 = arith.constant 0 : i32
    %c0_i32_0 = arith.constant 0 : i32
    %c0_i32_1 = arith.constant 0 : i32
    %c0_i32_2 = arith.constant 0 : i32
    return %c0_i32, %c0_i32_0, %c0_i32_1 : i32, i32, i32
  }
  func.func @transform_3(%arg0: i32) -> (i32, i32) {
    %c0_i32 = arith.constant 0 : i32
    %c0_i32_0 = arith.constant 0 : i32
    %c0_i32_1 = arith.constant 0 : i32
    return %c0_i32, %c0_i32_0 : i32, i32
  }
  func.func @transform_4(%arg0: i32) -> (i32, i32) {
    %c0_i32 = arith.constant 0 : i32
    %c0_i32_0 = arith.constant 0 : i32
    %c0_i32_1 = arith.constant 0 : i32
    return %c0_i32, %c0_i32_0 : i32, i32
  }
  func.func @transform_5(%arg0: i32) -> (i32, i32) {
    %c0_i32 = arith.constant 0 : i32
    %c0_i32_0 = arith.constant 0 : i32
    %c0_i32_1 = arith.constant 0 : i32
    return %c0_i32, %c0_i32_0 : i32, i32
  }
  func.func @transform_6(%arg0: i32) -> (i32, i32, i32, i32) {
    %c0_i32 = arith.constant 0 : i32
    %c0_i32_0 = arith.constant 0 : i32
    %c0_i32_1 = arith.constant 0 : i32
    %c0_i32_2 = arith.constant 0 : i32
    return %arg0, %c0_i32, %c0_i32_0, %c0_i32_1 : i32, i32, i32, i32
  }
}

</mosaic_0001>

<bundles_post_ra>
// kernel: bottle_forward.1
= control target key start
LH: loop header
LB: loop body
LE: loop exit
PB: predicated region body
PF: predicated region fallthrough
CT: control target
= control target key end

     0   :  { %s5641_s21 = smov 0   ;;  %s6863_s0 = inlined_call_operand.vmem [shape: bf16[2,432,128], index: 0, kind: input, shape index: {}]   ;;  %s6864_s1 = inlined_call_operand.vmem [shape: bf16[128,256], index: 1, kind: input, shape index: {}]   ;;  %s6865_s2 = inlined_call_operand.vmem [shape: bf16[9,128,128], index: 2, kind: input, shape index: {}]   ;;  %s6866_s3 = inlined_call_operand.vmem [shape: f32[1,128], index: 3, kind: input, shape index: {}]   ;;  %s6867_s4 = inlined_call_operand.vmem [shape: bf16[128,128], index: 4, kind: input, shape index: {}]   ;;  %s6868_s5 = inlined_call_operand.vmem [shape: f32[1,128], index: 5, kind: input, shape index: {}]   ;;  %s6869_s6 = inlined_call_operand.vmem [shape: f32[2,16,16,128], index: 6, kind: output, shape index: {}]  }
   0x1 LB: > { %s4184_s22 = sadd.s32 4294967295, %s5603_s21   ;;  %p4188_p0 = scmp.ge.s32.totalorder %s5603_s21, 1  ;;  %s5603_s21 = sphi %s5641_s21, %s16_s21  }
   0x2   : > { %p212_p1 = scmp.lt.s32.totalorder %s5603_s21, 3 }
   0x4   : > { %p213_p2 = pnand %p4188_p0, %p212_p1 }
   0x6   : > { %216 = sbr.rel (%p213_p2) target bundleno = 1300 (0x514), region = 44 }
   0xd   : > { %v5466_v0 = vld [vmem:[%s6864_s1 + $0x4] ss:$8 sps:$4 sm:$0xff]   ;;  %p242_p3 = scmp.lt.s32.totalorder %s4184_s22, 1  ;;  %v5468_v1 = vld [vmem:[%s6864_s1] ss:$8 sps:$4 sm:$0xff]   ;;  %v5605_v2 = vmov 0  }
   0xe   : > { %597 = vmatprep.mubr.bf16.mxu0 %v5605_v2  ;;  %565 = vmatprep.subr.bf16.mxu0 %v5466_v0  ;;  %v5469_v3 = vld [vmem:[%s6864_s1 + $0x14] ss:$8 sps:$4 sm:$0xff]   ;;  %v5471_v4 = vld [vmem:[%s6864_s1 + $0x10] ss:$8 sps:$4 sm:$0xff]   ;;  %v5472_v5 = vld [vmem:[%s6864_s1 + $0x24] ss:$8 sps:$4 sm:$0xff]  }
   0xf   : > { %s6937_s22 = smov (!%p242_p3, %s4184_s22), 1  ;;  %566 = vmatpush1.bf16.msra.mxu0 %v5468_v1  ;;  %v5474_v6 = vld [vmem:[%s6864_s1 + $0x20] ss:$8 sps:$4 sm:$0xff]   ;;  %v5475_v7 = vld [vmem:[%s6864_s1 + $0x34] ss:$8 sps:$4 sm:$0xff]   ;;  %vm2702_vm0 = vcmask 1046528  }
  0x10   : > { %567 = vmatprep.subr.bf16.mxu0 %v5469_v3  ;;  %s5456_s9 = smul.u32 216, %s6937_s22  ;;  %v5477_v8 = vld [vmem:[%s6864_s1 + $0x30] ss:$8 sps:$4 sm:$0xff]   ;;  %v5478_v9 = vld [vmem:[%s6864_s1 + $0x44] ss:$8 sps:$4 sm:$0xff]   ;;  %s4447_s26 = sshll.u32 %s6937_s22, 8 }
  0x11   : > { %v5480_v10 = vld [vmem:[%s6864_s1 + $0x40] ss:$8 sps:$4 sm:$0xff]   ;;  %v5481_v11 = vld [vmem:[%s6864_s1 + $0x54] ss:$8 sps:$4 sm:$0xff]   ;;  %v5483_v12 = vld [vmem:[%s6864_s1 + $0x50] ss:$8 sps:$4 sm:$0xff]   ;;  %s6766_s29 = scalar_lea.vmem %s6869_s6, %s4447_s26 }
  0x12   : > { %s5677_s16 = scalar_lea.vmem %s6863_s0, %s5456_s9  ;;  %v5484_v13 = vld [vmem:[%s6864_s1 + $0x64] ss:$8 sps:$4 sm:$0xff]   ;;  %v5486_v14 = vld [vmem:[%s6864_s1 + $0x60] ss:$8 sps:$4 sm:$0xff]   ;;  %v5487_v15 = vld [vmem:[%s6864_s1 + $0x74] ss:$8 sps:$4 sm:$0xff]  }
  0x13   : > { %568 = vmatpush1.bf16.msra.mxu0 %v5471_v4  ;;  %v5489_v16 = vld [vmem:[%s6864_s1 + $0x70] ss:$8 sps:$4 sm:$0xff]   ;;  %v5490_v17 = vld [vmem:[%s5677_s16] sm:$0xff]   ;;  %v5491_v18 = vld [vmem:[%s5677_s16 + $0x8] sm:$0xff]   ;;  %vm1661_vm1 = vsmask.f32 7424 }
  0x14   : > { %569 = vmatprep.subr.bf16.mxu0 %v5472_v5  ;;  %v5492_v19 = vld [vmem:[%s5677_s16 + $0x10] sm:$0xff]   ;;  %v5493_v20 = vld [vmem:[%s5677_s16 + $0x18] sm:$0xff]   ;;  %v5494_v21 = vld [vmem:[%s5677_s16 + $0x20] sm:$0xff]  }
  0x15   : > { %v5495_v22 = vld [vmem:[%s5677_s16 + $0x28] sm:$0xff]   ;;  %v5496_v23 = vld [vmem:[%s5677_s16 + $0x30] sm:$0xff]   ;;  %v5497_v24 = vld [vmem:[%s5677_s16 + $0x38] sm:$0xff]  }
  0x16   : > { %v5498_v25 = vld [vmem:[%s5677_s16 + $0x40] sm:$0xff]   ;;  %v5499_v26 = vld [vmem:[%s5677_s16 + $0x48] sm:$0xff]   ;;  %v5500_v27 = vld [vmem:[%s5677_s16 + $0x50] sm:$0xff]  }
  0x17   : > { %570 = vmatpush1.bf16.msra.mxu0 %v5474_v6  ;;  %v5517_v28 = vld [vmem:[%s6865_s2 + $0xc0] sm:$0xff]   ;;  %v5501_v29 = vld [vmem:[%s5677_s16 + $0x58] sm:$0xff]   ;;  %v5518_v30 = vld [vmem:[%s6865_s2 + $0xc8] sm:$0xff]  }
  0x18   : > { %571 = vmatprep.subr.bf16.mxu0 %v5475_v7  ;;  %v5519_v31 = vld [vmem:[%s6865_s2 + $0xd0] sm:$0xff]   ;;  %v5502_v32 = vld [vmem:[%s5677_s16 + $0x60] sm:$0xff]   ;;  %v5520_v33 = vld [vmem:[%s6865_s2 + $0xd8] sm:$0xff]  }
  0x19   : > { %v5521_v34 = vld [vmem:[%s6865_s2 + $0xe0] sm:$0xff]   ;;  %v5503_v35 = vld [vmem:[%s5677_s16 + $0x68] sm:$0xff]   ;;  %v5523_v37 = vld [vmem:[%s6865_s2 + $0xf0] sm:$0xff]  }
  0x1a   : > { %v5522_v36 = vld [vmem:[%s6865_s2 + $0xe8] sm:$0xff]   ;;  %v5504_v38 = vld [vmem:[%s5677_s16 + $0x70] sm:$0xff]   ;;  %v5524_v39 = vld [vmem:[%s6865_s2 + $0xf8] sm:$0xff]  }
  0x1b   : > { %572 = vmatpush1.bf16.msra.mxu0 %v5477_v8  ;;  %v5505_v40 = vld [vmem:[%s5677_s16 + $0x78] sm:$0xff]   ;;  %v5506_v41 = vld [vmem:[%s5677_s16 + $0x80] sm:$0xff]   ;;  %v5507_v42 = vld [vmem:[%s5677_s16 + $0x88] sm:$0xff]  }
  0x1c   : > { %573 = vmatprep.subr.bf16.mxu0 %v5478_v9  ;;  %v5508_v43 = vld [vmem:[%s5677_s16 + $0x90] sm:$0xff]   ;;  %v5509_v44 = vld [vmem:[%s5677_s16 + $0x98] sm:$0xff]   ;;  %v5510_v45 = vld [vmem:[%s5677_s16 + $0xa0] sm:$0xff]  }
  0x1d   : > { %v5511_v46 = vld [vmem:[%s5677_s16 + $0xa8] sm:$0xff]   ;;  %v5512_v47 = vld [vmem:[%s5677_s16 + $0xb0] sm:$0xff]   ;;  %v5513_v48 = vld [vmem:[%s5677_s16 + $0xb8] sm:$0xff]  }
  0x1e   : > { %v5514_v49 = vld [vmem:[%s5677_s16 + $0xc0] sm:$0xff]   ;;  %v5790_v51 = vld [vmem:[%s6865_s2 + $0x188] sm:$0xff]   ;;  %v5798_v53 = vld [vmem:[%s6865_s2 + $0x190] sm:$0xff]  }
  0x1f   : > { %574 = vmatpush1.bf16.msra.mxu0 %v5480_v10  ;;  %v5782_v50 = vld [vmem:[%s6865_s2 + $0x180] sm:$0xff]   ;;  %v5515_v52 = vld [vmem:[%s5677_s16 + $0xc8] sm:$0xff]   ;;  %v5806_v54 = vld [vmem:[%s6865_s2 + $0x198] sm:$0xff]  }
  0x20   : > { %575 = vmatprep.subr.bf16.mxu0 %v5481_v11  ;;  %5168 = vmatprep.subr.bf16.mxu1 %v5782_v50  ;;  %v5516_v55 = vld [vmem:[%s5677_s16 + $0xd0] sm:$0xff]   ;;  %v5814_v56 = vld [vmem:[%s6865_s2 + $0x1a0] sm:$0xff]   ;;  %v5821_v57 = vld [vmem:[%s6865_s2 + $0x1a8] sm:$0xff]  }
  0x21   : > { %5176 = vmatpush3.bf16.msra.mxu1 %v5782_v50  ;;  %v5828_v0 = vld [vmem:[%s6865_s2 + $0x1b0] sm:$0xff]  }
  0x22   : > { %5169 = vmatprep.subr.bf16.mxu1 %v5790_v51 }
  0x23   : > { %576 = vmatpush1.bf16.msra.mxu0 %v5483_v12 }
  0x24   : > { %577 = vmatprep.subr.bf16.mxu0 %v5484_v13 }
  0x25   : > { %5177 = vmatpush3.bf16.msra.mxu1 %v5790_v51 }
  0x26   : > { %5170 = vmatprep.subr.bf16.mxu1 %v5798_v53 }
  0x27   : > { %578 = vmatpush1.bf16.msra.mxu0 %v5486_v14 }
  0x28   : > { %579 = vmatprep.subr.bf16.mxu0 %v5487_v15 }
  0x29   : > { %5178 = vmatpush3.bf16.msra.mxu1 %v5798_v53 }
  0x2a   : > { %5171 = vmatprep.subr.bf16.mxu1 %v5806_v54 }
  0x2b   : > { %580 = vmatpush1.bf16.msra.mxu0 %v5489_v16 }
  0x2c   : > { %4688 = vmatprep.subr.bf16.mxu0 %v5517_v28 }
  0x2d   : > { %5179 = vmatpush3.bf16.msra.mxu1 %v5806_v54 }
  0x2e   : > { %598 = vmatmul.mubr.bf16.vlgmr.msra.gmra.mrb[0].mxu0 %v5490_v17  ;;  %5172 = vmatprep.subr.bf16.mxu1 %v5814_v56 }
  0x2f   : > { %605 = vmatprep.mubr.bf16.mxu0 %v5605_v2  ;;  %4689 = vmatpush3.bf16.msra.mxu0 %v5517_v28 }
  0x30   : > { %4690 = vmatprep.subr.bf16.mxu0 %v5518_v30 }
  0x31   : > { %5180 = vmatpush3.bf16.msra.mxu1 %v5814_v56 }
  0x32   : > { %5173 = vmatprep.subr.bf16.mxu1 %v5821_v57 }
  0x33   : > { %4691 = vmatpush3.bf16.msra.mxu0 %v5518_v30 }
  0x34   : > { %4692 = vmatprep.subr.bf16.mxu0 %v5519_v31 }
  0x35   : > { %5181 = vmatpush3.bf16.msra.mxu1 %v5821_v57 }
  0x36   : > { %606 = vmatmul.mubr.bf16.gmra.mrb[4].mxu0 %v5491_v18  ;;  %5174 = vmatprep.subr.bf16.mxu1 %v5828_v0 }
  0x37   : > { %614 = vmatprep.mubr.bf16.mxu0 %v5605_v2  ;;  %4693 = vmatpush3.bf16.msra.mxu0 %v5519_v31 }
  0x38   : > { %4694 = vmatprep.subr.bf16.mxu0 %v5520_v33 }
  0x39   : > { %5182 = vmatpush3.bf16.msra.mxu1 %v5828_v0 }
  0x3b   : > { %4695 = vmatpush3.bf16.msra.mxu0 %v5520_v33 }
  0x3c   : > { %4696 = vmatprep.subr.bf16.mxu0 %v5521_v34 }
  0x3e   : > { %615 = vmatmul.mubr.bf16.gmra.mrb[8].mxu0 %v5492_v19 }
  0x3f   : > { %624 = vmatprep.mubr.bf16.mxu0 %v5605_v2  ;;  %4697 = vmatpush3.bf16.msra.mxu0 %v5521_v34 }
  0x40   : > { %4698 = vmatprep.subr.bf16.mxu0 %v5522_v36 }
  0x43   : > { %4699 = vmatpush3.bf16.msra.mxu0 %v5522_v36 }
  0x44   : > { %4700 = vmatprep.subr.bf16.mxu0 %v5523_v37 }
  0x46   : > { %625 = vmatmul.mubr.bf16.gmra.mrb[12].mxu0 %v5493_v20 }
  0x47   : > { %634 = vmatprep.mubr.bf16.mxu0 %v5605_v2  ;;  %4701 = vmatpush3.bf16.msra.mxu0 %v5523_v37 }
  0x48   : > { %4702 = vmatprep.subr.bf16.mxu0 %v5524_v39 }
  0x4b   : > { %4703 = vmatpush3.bf16.msra.mxu0 %v5524_v39 }
  0x4e   : > { %635 = vmatmul.mubr.bf16.gmra.mrb[16].mxu0 %v5494_v21 }
  0x4f   : > { %644 = vmatprep.mubr.bf16.mxu0 %v5605_v2 }
  0x56   : > { %645 = vmatmul.mubr.bf16.gmra.mrb[20].mxu0 %v5495_v22 }
  0x57   : > { %654 = vmatprep.mubr.bf16.mxu0 %v5605_v2 }
  0x5e   : > { %655 = vmatmul.mubr.bf16.gmra.mrb[24].mxu0 %v5496_v23 }
  0x5f   : > { %664 = vmatprep.mubr.bf16.mxu0 %v5605_v2 }
  0x66   : > { %665 = vmatmul.mubr.bf16.gmra.mrb[28].mxu0 %v5497_v24 }
  0x67   : > { %674 = vmatprep.mubr.bf16.mxu0 %v5605_v2 }
  0x6e   : > { %675 = vmatmul.mubr.bf16.gmra.mrb[32].mxu0 %v5498_v25 }
  0x6f   : > { %684 = vmatprep.mubr.bf16.mxu0 %v5605_v2 }
  0x76   : > { %685 = vmatmul.mubr.bf16.gmra.mrb[36].mxu0 %v5499_v26 }
  0x77   : > { %694 = vmatprep.mubr.bf16.mxu0 %v5605_v2 }
  0x7e   : > { %695 = vmatmul.mubr.bf16.gmra.mrb[40].mxu0 %v5500_v27 }
  0x7f   : > { %704 = vmatprep.mubr.bf16.mxu0 %v5605_v2 }
  0x86   : > { %705 = vmatmul.mubr.bf16.gmra.mrb[44].mxu0 %v5501_v29 }
  0x87   : > { %714 = vmatprep.mubr.bf16.mxu0 %v5605_v2 }
  0x8e   : > { %715 = vmatmul.mubr.bf16.gmra.mrb[48].mxu0 %v5502_v32 }
  0x8f   : > { %724 = vmatprep.mubr.bf16.mxu0 %v5605_v2 }
  0x96   : > { %725 = vmatmul.mubr.bf16.gmra.mrb[52].mxu0 %v5503_v35 }
  0x97   : > { %734 = vmatprep.mubr.bf16.mxu0 %v5605_v2 }
  0x9e   : > { %735 = vmatmul.mubr.bf16.gmra.mrb[56].mxu0 %v5504_v38 }
  0x9f   : > { %744 = vmatprep.mubr.bf16.mxu0 %v5605_v2 }
  0xa6   : > { %745 = vmatmul.mubr.bf16.gmra.mrb[60].mxu0 %v5505_v40 }
  0xa7   : > { %754 = vmatprep.mubr.bf16.mxu0 %v5605_v2 }
  0xae   : > { %755 = vmatmul.mubr.bf16.gmra.mrb[64].mxu0 %v5506_v41 }
  0xaf   : > { %764 = vmatprep.mubr.bf16.mxu0 %v5605_v2 }
  0xb6   : > { %765 = vmatmul.mubr.bf16.gmra.mrb[68].mxu0 %v5507_v42 }
  0xb7   : > { %774 = vmatprep.mubr.bf16.mxu0 %v5605_v2 }
  0xbe   : > { %775 = vmatmul.mubr.bf16.gmra.mrb[72].mxu0 %v5508_v43 }
  0xbf   : > { %784 = vmatprep.mubr.bf16.mxu0 %v5605_v2 }
  0xc6   : > { %785 = vmatmul.mubr.bf16.gmra.mrb[76].mxu0 %v5509_v44 }
  0xc7   : > { %794 = vmatprep.mubr.bf16.mxu0 %v5605_v2 }
  0xce   : > { %795 = vmatmul.mubr.bf16.gmra.mrb[80].mxu0 %v5510_v45 }
  0xcf   : > { %804 = vmatprep.mubr.bf16.mxu0 %v5605_v2 }
  0xd6   : > { %805 = vmatmul.mubr.bf16.gmra.mrb[84].mxu0 %v5511_v46  ;;  %v5533_v46 = vld [vmem:[%s6865_s2] sm:$0xff]  }
  0xd7   : > { %814 = vmatprep.mubr.bf16.mxu0 %v5605_v2  ;;  %4736 = vmatprep.subr.bf16.mxu0 %v5533_v46 }
  0xde   : > { %815 = vmatmul.mubr.bf16.gmra.mrb[88].mxu0 %v5512_v47 }
  0xdf   : > { %824 = vmatprep.mubr.bf16.mxu0 %v5605_v2 }
  0xe6   : > { %825 = vmatmul.mubr.bf16.gmra.mrb[92].mxu0 %v5513_v48 }
  0xe7   : > { %834 = vmatprep.mubr.bf16.mxu0 %v5605_v2 }
  0xee   : > { %835 = vmatmul.mubr.bf16.gmra.mrb[96].mxu0 %v5514_v49 }
  0xef   : > { %844 = vmatprep.mubr.bf16.mxu0 %v5605_v2 }
  0xf6   : > { %845 = vmatmul.mubr.bf16.gmra.mrb[100].mxu0 %v5515_v52  ;;  %v5534_v52 = vld [vmem:[%s6865_s2 + $0x8] sm:$0xff]  }
  0xf7   : > { %853 = vmatprep.mubr.bf16.mxu0 %v5605_v2  ;;  %v5837_v2 = vld [vmem:[%s6865_s2 + $0x1b8] sm:$0xff]  }
  0xf8   : > { %5175 = vmatprep.subr.bf16.mxu1 %v5837_v2 }
  0xf9   : > { %5183 = vmatpush3.bf16.msra.mxu1 %v5837_v2 }
  0xfe   : > { %854 = vmatmul.mubr.bf16.gmra.mrb[104].mxu0 %v5516_v55 }
 0x101   : > { %v599_v58 = vpop.f32.mrb[0].mxu0 }
 0x102   : > { %v601_v59 = vpop.f32.mrb[1].mxu0  ;;  %v862_v61 = vmax.f32 %v599_v58, 0.0 }
 0x103   : > { %v602_v60 = vpop.f32.mrb[2].mxu0 }
 0x104   : > { %v863_v62 = vmax.f32 %v602_v60, 0.0  ;;  %v604_v63 = vpop.f32.mrb[3].mxu0 }
 0x106   : > { %v5830_v1 = vpack.c.bf16 %v863_v62, %v862_v61 }
 0x109   : > { %v5839_v3 = vpop.f32.mrb[4].mxu0 }
 0x10a   : > { %v609_v4 = vpop.f32.mrb[5].mxu0 }
 0x10b   : > { %v610_v5 = vpop.f32.mrb[6].mxu0  ;;  %v5535_v4 = vld [vmem:[%s6865_s2 + $0x10] sm:$0xff]  }
 0x10c   : > { %v612_v6 = vpop.f32.mrb[7].mxu0  ;;  %v865_v8 = vmax.f32 %v610_v5, 0.0 }
 0x10d   : > { %v3921_v11 = vrot.slane %v612_v6, 1 }
 0x111   : > { %v616_v7 = vpop.f32.mrb[8].mxu0 }
 0x112   : > { %v866_v9 = vmax.f32 %v616_v7, 0.0  ;;  %v618_v10 = vpop.f32.mrb[9].mxu0 }
 0x113   : > { %v3922_v12 = vrot.slane %v618_v10, 1  ;;  %v5843_v13 = vpop.f32.mrb[10].mxu0 }
 0x114   : > { %v5845_v14 = vpack.c.bf16 %v866_v9, %v865_v8  ;;  %v622_v15 = vpop.f32.mrb[11].mxu0  ;;  %v5536_v8 = vld [vmem:[%s6865_s2 + $0x18] sm:$0xff]  }
 0x115   : > { %v3924_v16 = vrot.slane %v622_v15, 1  ;;  %v5848_v17 = vsel %vm2702_vm0, %v3921_v11, %v3922_v12 }
 0x116   : > { %6870 = vst [vmem:[#allocation2_spill] sm:$0xff] %v5848_v17  ;;  %4704 = vmatprep.mubr.bf16.mxu0 %v5845_v14 }
 0x117   : > { %v5852_v18 = vsel %vm2702_vm0, %v3922_v12, %v3924_v16  ;;  %v5899_v12 = vld [vmem:[%s6865_s2 + $0x40] sm:$0xff]  }
 0x118   : > { %6871 = vst [vmem:[#allocation3_spill] sm:$0xff] %v5852_v18  ;;  %4832 = vmatprep.subr.bf16.mxu1 %v5899_v12  ;;  %v5538_v16 = vld [vmem:[%s6865_s2 + $0x20] sm:$0xff]  }
 0x119   : > { %v626_v19 = vpop.f32.mrb[12].mxu0 }
 0x11a   : > { %v628_v20 = vpop.f32.mrb[13].mxu0  ;;  %v868_v22 = vmax.f32 %v626_v19, 0.0 }
 0x11b   : > { %v630_v21 = vpop.f32.mrb[14].mxu0  ;;  %v3926_v25 = vrot.slane %v628_v20, 1 }
 0x11c   : > { %v869_v23 = vmax.f32 %v630_v21, 0.0  ;;  %v632_v24 = vpop.f32.mrb[15].mxu0 }
 0x11d   : > { %v3927_v26 = vrot.slane %v632_v24, 1 }
 0x11e   : > { %v5854_v27 = vpack.c.bf16 %v869_v23, %v868_v22  ;;  %v5540_v23 = vld [vmem:[%s6865_s2 + $0x28] sm:$0xff]  }
 0x11f   : > { %v5857_v28 = vsel %vm2702_vm0, %v3926_v25, %v3927_v26 }
 0x120   : > { %6872 = vst [vmem:[#allocation4_spill] sm:$0xff] %v5857_v28  ;;  %4705 = vmatmul.mubr.bf16.vlgmr.msra.gmra.mrb[108].mxu0 %v5854_v27 }
 0x121   : > { %v5860_v29 = vpop.f32.mrb[16].mxu0  ;;  %4737 = vmatpush3.bf16.msra.mxu0 %v5533_v46 }
 0x122   : > { %v638_v30 = vpop.f32.mrb[17].mxu0  ;;  %4738 = vmatprep.subr.bf16.mxu0 %v5534_v52 }
 0x123   : > { %v3929_v31 = vrot.slane %v638_v30, 1  ;;  %v640_v32 = vpop.f32.mrb[18].mxu0 }
 0x124   : > { %v642_v33 = vpop.f32.mrb[19].mxu0  ;;  %v871_v36 = vmax.f32 %v640_v32, 0.0 }
 0x125   : > { %v5863_v34 = vsel %vm2702_vm0, %v3927_v26, %v3929_v31  ;;  %v3931_v39 = vrot.slane %v642_v33, 1  ;;  %4739 = vmatpush3.bf16.msra.mxu0 %v5534_v52 }
 0x126   : > { %6873 = vst [vmem:[#allocation5_spill] sm:$0xff] %v5863_v34  ;;  %4740 = vmatprep.subr.bf16.mxu0 %v5535_v4 }
 0x129   : > { %v646_v35 = vpop.f32.mrb[20].mxu0  ;;  %4741 = vmatpush3.bf16.msra.mxu0 %v5535_v4 }
 0x12a   : > { %v872_v37 = vmax.f32 %v646_v35, 0.0  ;;  %v648_v38 = vpop.f32.mrb[21].mxu0  ;;  %4742 = vmatprep.subr.bf16.mxu0 %v5536_v8  ;;  %v5542_v35 = vld [vmem:[%s6865_s2 + $0x30] sm:$0xff]  }
 0x12b   : > { %v3932_v40 = vrot.slane %v648_v38, 1  ;;  %v5865_v41 = vpop.f32.mrb[22].mxu0 }
 0x12c   : > { %v5867_v42 = vpack.c.bf16 %v872_v37, %v871_v36  ;;  %v652_v43 = vpop.f32.mrb[23].mxu0 }
 0x12d   : > { %v3934_v44 = vrot.slane %v652_v43, 1  ;;  %v5870_v45 = vsel %vm2702_vm0, %v3931_v39, %v3932_v40  ;;  %4743 = vmatpush3.bf16.msra.mxu0 %v5536_v8  ;;  %v5544_v39 = vld [vmem:[%s6865_s2 + $0x38] sm:$0xff]  }
 0x12e   : > { %6874 = vst [vmem:[#allocation6_spill] sm:$0xff] %v5870_v45  ;;  %4708 = vmatprep.mubr.bf16.mxu0 %v5867_v42  ;;  %4744 = vmatprep.subr.bf16.mxu0 %v5538_v16 }
 0x12f   : > { %v5877_v47 = vsel %vm2702_vm0, %v3932_v40, %v3934_v44 }
 0x130   : > { %6875 = vst [vmem:[#allocation7_spill] sm:$0xff] %v5877_v47 }
 0x131   : > { %v656_v48 = vpop.f32.mrb[24].mxu0  ;;  %4745 = vmatpush3.bf16.msra.mxu0 %v5538_v16 }
 0x132   : > { %v658_v49 = vpop.f32.mrb[25].mxu0  ;;  %v874_v58 = vmax.f32 %v656_v48, 0.0  ;;  %4746 = vmatprep.subr.bf16.mxu0 %v5540_v23 }
 0x133   : > { %v660_v55 = vpop.f32.mrb[26].mxu0  ;;  %v3936_v61 = vrot.slane %v658_v49, 1 }
 0x134   : > { %v875_v59 = vmax.f32 %v660_v55, 0.0  ;;  %v662_v60 = vpop.f32.mrb[27].mxu0 }
 0x135   : > { %v3937_v62 = vrot.slane %v662_v60, 1  ;;  %4747 = vmatpush3.bf16.msra.mxu0 %v5540_v23 }
 0x136   : > { %v5882_v63 = vpack.c.bf16 %v875_v59, %v874_v58  ;;  %4748 = vmatprep.subr.bf16.mxu0 %v5542_v35 }
 0x137   : > { %v5888_v5 = vsel %vm2702_vm0, %v3936_v61, %v3937_v62 }
 0x138   : > { %6876 = vst [vmem:[#allocation8_spill] sm:$0xff] %v5888_v5  ;;  %4709 = vmatmul.mubr.bf16.gmra.mrb[112].mxu0 %v5882_v63 }
 0x139   : > { %v5891_v6 = vpop.f32.mrb[28].mxu0  ;;  %4749 = vmatpush3.bf16.msra.mxu0 %v5542_v35 }
 0x13a   : > { %v668_v7 = vpop.f32.mrb[29].mxu0  ;;  %4750 = vmatprep.subr.bf16.mxu0 %v5544_v39 }
 0x13b   : > { %v3939_v9 = vrot.slane %v668_v7, 1  ;;  %v670_v10 = vpop.f32.mrb[30].mxu0 }
 0x13c   : > { %v672_v11 = vpop.f32.mrb[31].mxu0  ;;  %v877_v20 = vmax.f32 %v670_v10, 0.0 }
 0x13d   : > { %v5902_v15 = vsel %vm2702_vm0, %v3937_v62, %v3939_v9  ;;  %v3941_v24 = vrot.slane %v672_v11, 1  ;;  %4751 = vmatpush3.bf16.msra.mxu0 %v5544_v39 }
 0x13e   : > { %6877 = vst [vmem:[#allocation9_spill] sm:$0xff] %v5902_v15  ;;  %4784 = vmatprep.subr.bf16.mxu0 %v5782_v50 }
 0x141   : > { %v676_v19 = vpop.f32.mrb[32].mxu0 }
 0x142   : > { %v878_v21 = vmax.f32 %v676_v19, 0.0  ;;  %v678_v22 = vpop.f32.mrb[33].mxu0 }
 0x143   : > { %v3942_v25 = vrot.slane %v678_v22, 1  ;;  %v5911_v26 = vpop.f32.mrb[34].mxu0 }
 0x144   : > { %v5913_v30 = vpack.c.bf16 %v878_v21, %v877_v20  ;;  %v682_v31 = vpop.f32.mrb[35].mxu0 }
 0x145   : > { %v3944_v32 = vrot.slane %v682_v31, 1  ;;  %v5916_v33 = vsel %vm2702_vm0, %v3941_v24, %v3942_v25 }
 0x146   : > { %6878 = vst [vmem:[#allocation10_spill] sm:$0xff] %v5916_v33  ;;  %4712 = vmatprep.mubr.bf16.mxu0 %v5913_v30 }
 0x147   : > { %v5923_v36 = vsel %vm2702_vm0, %v3942_v25, %v3944_v32 }
 0x148   : > { %6879 = vst [vmem:[#allocation11_spill] sm:$0xff] %v5923_v36 }
 0x149   : > { %v686_v37 = vpop.f32.mrb[36].mxu0 }
 0x14a   : > { %v688_v38 = vpop.f32.mrb[37].mxu0  ;;  %v880_v43 = vmax.f32 %v686_v37, 0.0 }
 0x14b   : > { %v690_v40 = vpop.f32.mrb[38].mxu0  ;;  %v3946_v48 = vrot.slane %v688_v38, 1 }
 0x14c   : > { %v881_v44 = vmax.f32 %v690_v40, 0.0  ;;  %v692_v46 = vpop.f32.mrb[39].mxu0 }
 0x14d   : > { %v3947_v49 = vrot.slane %v692_v46, 1 }
 0x14e   : > { %v5928_v52 = vpack.c.bf16 %v881_v44, %v880_v43 }
 0x14f   : > { %v5932_v55 = vsel %vm2702_vm0, %v3946_v48, %v3947_v49 }
 0x150   : > { %6880 = vst [vmem:[#allocation12_spill] sm:$0xff] %v5932_v55  ;;  %4713 = vmatmul.mubr.bf16.gmra.mrb[116].mxu0 %v5928_v52 }
 0x151   : > { %v5935_v58 = vpop.f32.mrb[40].mxu0 }
 0x152   : > { %v698_v59 = vpop.f32.mrb[41].mxu0 }
 0x153   : > { %v3949_v60 = vrot.slane %v698_v59, 1  ;;  %v700_v61 = vpop.f32.mrb[42].mxu0 }
 0x154   : > { %v702_v62 = vpop.f32.mrb[43].mxu0  ;;  %v883_v8 = vmax.f32 %v700_v61, 0.0 }
 0x155   : > { %v5938_v4 = vsel %vm2702_vm0, %v3947_v49, %v3949_v60  ;;  %v3951_v11 = vrot.slane %v702_v62, 1 }
 0x156   : > { %6881 = vst [vmem:[#allocation13_spill] sm:$0xff] %v5938_v4 }
 0x159   : > { %v706_v7 = vpop.f32.mrb[44].mxu0 }
 0x15a   : > { %v884_v9 = vmax.f32 %v706_v7, 0.0  ;;  %v708_v10 = vpop.f32.mrb[45].mxu0 }
 0x15b   : > { %v3952_v16 = vrot.slane %v708_v10, 1  ;;  %v5940_v19 = vpop.f32.mrb[46].mxu0 }
 0x15c   : > { %v5942_v20 = vpack.c.bf16 %v884_v9, %v883_v8  ;;  %v712_v21 = vpop.f32.mrb[47].mxu0 }
 0x15d   : > { %v3954_v22 = vrot.slane %v712_v21, 1  ;;  %v5945_v23 = vsel %vm2702_vm0, %v3951_v11, %v3952_v16 }
 0x15e   : > { %6882 = vst [vmem:[#allocation14_spill] sm:$0xff] %v5945_v23  ;;  %4716 = vmatprep.mubr.bf16.mxu0 %v5942_v20 }
 0x15f   : > { %v5949_v24 = vsel %vm2702_vm0, %v3952_v16, %v3954_v22 }
 0x160   : > { %6883 = vst [vmem:[#allocation15_spill] sm:$0xff] %v5949_v24 }
 0x161   : > { %v716_v25 = vpop.f32.mrb[48].mxu0 }
 0x162   : > { %v718_v31 = vpop.f32.mrb[49].mxu0  ;;  %v886_v35 = vmax.f32 %v716_v25, 0.0 }
 0x163   : > { %v720_v32 = vpop.f32.mrb[50].mxu0  ;;  %v3956_v39 = vrot.slane %v718_v31, 1 }
 0x164   : > { %v887_v37 = vmax.f32 %v720_v32, 0.0  ;;  %v722_v38 = vpop.f32.mrb[51].mxu0 }
 0x165   : > { %v3957_v40 = vrot.slane %v722_v38, 1 }
 0x166   : > { %v5951_v43 = vpack.c.bf16 %v887_v37, %v886_v35 }
 0x167   : > { %v5954_v44 = vsel %vm2702_vm0, %v3956_v39, %v3957_v40 }
 0x168   : > { %6884 = vst [vmem:[#allocation16_spill] sm:$0xff] %v5954_v44  ;;  %4717 = vmatmul.mubr.bf16.gmra.mrb[120].mxu0 %v5951_v43 }
 0x169   : > { %v5957_v46 = vpop.f32.mrb[52].mxu0 }
 0x16a   : > { %v728_v48 = vpop.f32.mrb[53].mxu0 }
 0x16b   : > { %v3959_v49 = vrot.slane %v728_v48, 1  ;;  %v730_v59 = vpop.f32.mrb[54].mxu0 }
 0x16c   : > { %v732_v60 = vpop.f32.mrb[55].mxu0  ;;  %v889_v7 = vmax.f32 %v730_v59, 0.0 }
 0x16d   : > { %v5960_v61 = vsel %vm2702_vm0, %v3957_v40, %v3959_v49  ;;  %v3961_v10 = vrot.slane %v732_v60, 1 }
 0x16e   : > { %6885 = vst [vmem:[#allocation17_spill] sm:$0xff] %v5960_v61 }
 0x171   : > { %v736_v62 = vpop.f32.mrb[56].mxu0 }
 0x172   : > { %v890_v8 = vmax.f32 %v736_v62, 0.0  ;;  %v738_v9 = vpop.f32.mrb[57].mxu0 }
 0x173   : > { %v3962_v11 = vrot.slane %v738_v9, 1  ;;  %v5962_v16 = vpop.f32.mrb[58].mxu0 }
 0x174   : > { %v5964_v21 = vpack.c.bf16 %v890_v8, %v889_v7  ;;  %v742_v22 = vpop.f32.mrb[59].mxu0 }
 0x175   : > { %v3964_v25 = vrot.slane %v742_v22, 1  ;;  %v5967_v31 = vsel %vm2702_vm0, %v3961_v10, %v3962_v11 }
 0x176   : > { %6886 = vst [vmem:[#allocation18_spill] sm:$0xff] %v5967_v31  ;;  %4720 = vmatprep.mubr.bf16.mxu0 %v5964_v21 }
 0x177   : > { %v5971_v32 = vsel %vm2702_vm0, %v3962_v11, %v3964_v25 }
 0x178   : > { %6887 = vst [vmem:[#allocation19_spill] sm:$0xff] %v5971_v32 }
 0x179   : > { %v746_v35 = vpop.f32.mrb[60].mxu0 }
 0x17a   : > { %v748_v37 = vpop.f32.mrb[61].mxu0  ;;  %v892_v39 = vmax.f32 %v746_v35, 0.0 }
 0x17b   : > { %v750_v38 = vpop.f32.mrb[62].mxu0  ;;  %v3966_v49 = vrot.slane %v748_v37, 1 }
 0x17c   : > { %v893_v40 = vmax.f32 %v750_v38, 0.0  ;;  %v752_v48 = vpop.f32.mrb[63].mxu0 }
 0x17d   : > { %v3967_v59 = vrot.slane %v752_v48, 1 }
 0x17e   : > { %v5973_v60 = vpack.c.bf16 %v893_v40, %v892_v39 }
 0x17f   : > { %v5976_v62 = vsel %vm2702_vm0, %v3966_v49, %v3967_v59 }
 0x180   : > { %6888 = vst [vmem:[#allocation20_spill] sm:$0xff] %v5976_v62  ;;  %4721 = vmatmul.mubr.bf16.gmra.mrb[124].mxu0 %v5973_v60  ;;  %4816 = vmatprep.mubr.bf16.mxu1 %v5973_v60 }
 0x181   : > { %v5980_v7 = vpop.f32.mrb[64].mxu0 }
 0x182   : > { %v758_v8 = vpop.f32.mrb[65].mxu0 }
 0x183   : > { %v3969_v9 = vrot.slane %v758_v8, 1  ;;  %v760_v10 = vpop.f32.mrb[66].mxu0  ;;  %v5539_v8 = vld [vmem:[%s6865_s2 + $0x48] sm:$0xff]  }
 0x184   : > { %v762_v11 = vpop.f32.mrb[67].mxu0  ;;  %v895_v35 = vmax.f32 %v760_v10, 0.0 }
 0x185   : > { %v5983_v22 = vsel %vm2702_vm0, %v3967_v59, %v3969_v9  ;;  %v3971_v39 = vrot.slane %v762_v11, 1  ;;  %v5541_v9 = vld [vmem:[%s6865_s2 + $0x50] sm:$0xff]  }
 0x186   : > { %6889 = vst [vmem:[#allocation21_spill] sm:$0xff] %v5983_v22 }
 0x189   : > { %v766_v25 = vpop.f32.mrb[68].mxu0 }
 0x18a   : > { %v896_v37 = vmax.f32 %v766_v25, 0.0  ;;  %v768_v38 = vpop.f32.mrb[69].mxu0 }
 0x18b   : > { %v3972_v40 = vrot.slane %v768_v38, 1  ;;  %v5985_v48 = vpop.f32.mrb[70].mxu0 }
 0x18c   : > { %v5987_v49 = vpack.c.bf16 %v896_v37, %v895_v35  ;;  %v772_v32 = vpop.f32.mrb[71].mxu0 }
 0x18d   : > { %v3974_v31 = vrot.slane %v772_v32, 1  ;;  %v5993_v62 = vsel %vm2702_vm0, %v3971_v39, %v3972_v40 }
 0x18e   : > { %6890 = vst [vmem:[#allocation22_spill] sm:$0xff] %v5993_v62  ;;  %4724 = vmatprep.mubr.bf16.mxu0 %v5987_v49  ;;  %4817 = vmatmul.mubr.bf16.vlgmr.msra.gmra.mrb[0].mxu1 %v5987_v49 }
 0x18f   : > { %4833 = vmatpush3.bf16.msra.mxu1 %v5899_v12  ;;  %v5999_v59 = vsel %vm2702_vm0, %v3972_v40, %v3974_v31  ;;  %v5543_v12 = vld [vmem:[%s6865_s2 + $0x58] sm:$0xff]  }
 0x190   : > { %6891 = vst [vmem:[#allocation23_spill] sm:$0xff] %v5999_v59  ;;  %4834 = vmatprep.subr.bf16.mxu1 %v5539_v8 }
 0x191   : > { %v776_v10 = vpop.f32.mrb[72].mxu0 }
 0x192   : > { %v778_v11 = vpop.f32.mrb[73].mxu0  ;;  %v898_v25 = vmax.f32 %v776_v10, 0.0 }
 0x193   : > { %v780_v32 = vpop.f32.mrb[74].mxu0  ;;  %4835 = vmatpush3.bf16.msra.mxu1 %v5539_v8  ;;  %v3976_v38 = vrot.slane %v778_v11, 1  ;;  %v5545_v8 = vld [vmem:[%s6865_s2 + $0x60] sm:$0xff]  }
 0x194   : > { %v899_v35 = vmax.f32 %v780_v32, 0.0  ;;  %v782_v37 = vpop.f32.mrb[75].mxu0  ;;  %4836 = vmatprep.subr.bf16.mxu1 %v5541_v9 }
 0x195   : > { %v3977_v39 = vrot.slane %v782_v37, 1 }
 0x196   : > { %v6007_v31 = vpack.c.bf16 %v899_v35, %v898_v25 }
 0x197   : > { %4837 = vmatpush3.bf16.msra.mxu1 %v5541_v9  ;;  %v6010_v40 = vsel %vm2702_vm0, %v3976_v38, %v3977_v39  ;;  %v5546_v9 = vld [vmem:[%s6865_s2 + $0x68] sm:$0xff]   ;;  %v5547_v38 = vld [vmem:[%s6865_s2 + $0x70] sm:$0xff]  }
 0x198   : > { %6892 = vst [vmem:[#allocation24_spill] sm:$0xff] %v6010_v40  ;;  %4725 = vmatmul.mubr.bf16.gmra.mrb[128].mxu0 %v6007_v31  ;;  %4820 = vmatprep.mubr.bf16.mxu1 %v6007_v31 }
 0x199   : > { %v6017_v10 = vpop.f32.mrb[76].mxu0  ;;  %4838 = vmatprep.subr.bf16.mxu1 %v5543_v12 }
 0x19a   : > { %v788_v11 = vpop.f32.mrb[77].mxu0 }
 0x19b   : > { %v3979_v32 = vrot.slane %v788_v11, 1  ;;  %v790_v37 = vpop.f32.mrb[78].mxu0  ;;  %4839 = vmatpush3.bf16.msra.mxu1 %v5543_v12 }
 0x19c   : > { %v792_v25 = vpop.f32.mrb[79].mxu0  ;;  %4840 = vmatprep.subr.bf16.mxu1 %v5545_v8  ;;  %v901_v62 = vmax.f32 %v790_v37, 0.0 }
 0x19d   : > { %v6023_v35 = vsel %vm2702_vm0, %v3977_v39, %v3979_v32  ;;  %v3981_v12 = vrot.slane %v792_v25, 1  ;;  %v5548_v39 = vld [vmem:[%s6865_s2 + $0x78] sm:$0xff]  }
 0x19e   : > { %6893 = vst [vmem:[#allocation25_spill] sm:$0xff] %v6023_v35 }
 0x19f   : > { %4841 = vmatpush3.bf16.msra.mxu1 %v5545_v8 }
 0x1a0   : > { %4842 = vmatprep.subr.bf16.mxu1 %v5546_v9 }
 0x1a1   : > { %v796_v59 = vpop.f32.mrb[80].mxu0 }
 0x1a2   : > { %v902_v11 = vmax.f32 %v796_v59, 0.0  ;;  %v798_v40 = vpop.f32.mrb[81].mxu0 }
 0x1a3   : > { %v3982_v22 = vrot.slane %v798_v40, 1  ;;  %v6028_v24 = vpop.f32.mrb[82].mxu0  ;;  %4843 = vmatpush3.bf16.msra.mxu1 %v5546_v9 }
 0x1a4   : > { %v6030_v61 = vpack.c.bf16 %v902_v11, %v901_v62  ;;  %v802_v23 = vpop.f32.mrb[83].mxu0  ;;  %4844 = vmatprep.subr.bf16.mxu1 %v5547_v38  ;;  %v6046_v62 = vld [vmem:[%s6865_s2 + $0x100] sm:$0xff]  }
 0x1a5   : > { %v3984_v8 = vrot.slane %v802_v23, 1  ;;  %v6036_v32 = vsel %vm2702_vm0, %v3981_v12, %v3982_v22 }
 0x1a6   : > { %6894 = vst [vmem:[#allocation26_spill] sm:$0xff] %v6036_v32  ;;  %4728 = vmatprep.mubr.bf16.mxu0 %v6030_v61  ;;  %4821 = vmatmul.mubr.bf16.gmra.mrb[4].mxu1 %v6030_v61 }
 0x1a7   : > { %4845 = vmatpush3.bf16.msra.mxu1 %v5547_v38  ;;  %v6041_v59 = vsel %vm2702_vm0, %v3982_v22, %v3984_v8 }
 0x1a8   : > { %6895 = vst [vmem:[#allocation27_spill] sm:$0xff] %v6041_v59  ;;  %4846 = vmatprep.subr.bf16.mxu1 %v5548_v39 }
 0x1a9   : > { %v806_v40 = vpop.f32.mrb[84].mxu0 }
 0x1aa   : > { %v808_v37 = vpop.f32.mrb[85].mxu0  ;;  %v904_v25 = vmax.f32 %v806_v40, 0.0 }
 0x1ab   : > { %v810_v23 = vpop.f32.mrb[86].mxu0  ;;  %4847 = vmatpush3.bf16.msra.mxu1 %v5548_v39  ;;  %v3986_v12 = vrot.slane %v808_v37, 1 }
 0x1ac   : > { %v905_v9 = vmax.f32 %v810_v23, 0.0  ;;  %v812_v11 = vpop.f32.mrb[87].mxu0  ;;  %4880 = vmatprep.subr.bf16.mxu1 %v6046_v62 }
 0x1ad   : > { %v3987_v38 = vrot.slane %v812_v11, 1 }
 0x1ae   : > { %v6049_v32 = vpack.c.bf16 %v905_v9, %v904_v25 }
 0x1af   : > { %v6052_v22 = vsel %vm2702_vm0, %v3986_v12, %v3987_v38 }
 0x1b0   : > { %6896 = vst [vmem:[#allocation28_spill] sm:$0xff] %v6052_v22  ;;  %4729 = vmatmul.mubr.bf16.gmra.mrb[132].mxu0 %v6049_v32  ;;  %4824 = vmatprep.mubr.bf16.mxu1 %v6049_v32 }
 0x1b1   : > { %v6056_v8 = vpop.f32.mrb[88].mxu0 }
 0x1b2   : > { %v818_v59 = vpop.f32.mrb[89].mxu0 }
 0x1b3   : > { %v3989_v39 = vrot.slane %v818_v59, 1  ;;  %v820_v40 = vpop.f32.mrb[90].mxu0 }
 0x1b4   : > { %v822_v23 = vpop.f32.mrb[91].mxu0  ;;  %v907_v11 = vmax.f32 %v820_v40, 0.0 }
 0x1b5   : > { %v6059_v35 = vsel %vm2702_vm0, %v3987_v38, %v3989_v39  ;;  %v3991_v44 = vrot.slane %v822_v23, 1 }
 0x1b6   : > { %6897 = vst [vmem:[#allocation29_spill] sm:$0xff] %v6059_v35 }
 0x1b9   : > { %v826_v37 = vpop.f32.mrb[92].mxu0 }
 0x1ba   : > { %v908_v25 = vmax.f32 %v826_v37, 0.0  ;;  %v828_v9 = vpop.f32.mrb[93].mxu0 }
 0x1bb   : > { %v3992_v12 = vrot.slane %v828_v9, 1  ;;  %v6061_v22 = vpop.f32.mrb[94].mxu0 }
 0x1bc   : > { %v6063_v36 = vpack.c.bf16 %v908_v25, %v907_v11  ;;  %v832_v4 = vpop.f32.mrb[95].mxu0  ;;  %v864_v11 = vmax.f32 %v5839_v3, 0.0 }
 0x1bd   : > { %v3994_v33 = vrot.slane %v832_v4, 1  ;;  %v6066_v55 = vsel %vm2702_vm0, %v3991_v44, %v3992_v12 }
 0x1be   : > { %6898 = vst [vmem:[#allocation30_spill] sm:$0xff] %v6066_v55  ;;  %4732 = vmatprep.mubr.bf16.mxu0 %v6063_v36  ;;  %4825 = vmatmul.mubr.bf16.gmra.mrb[8].mxu1 %v6063_v36  ;;  %v6077_v47 = vpack.c.bf16 %v864_v11, %v864_v11 }
 0x1bf   : > { %v6071_v59 = vsel %vm2702_vm0, %v3992_v12, %v3994_v33 }
 0x1c0   : > { %6899 = vst [vmem:[#allocation31_spill] sm:$0xff] %v6071_v59 }
 0x1c1   : > { %v836_v38 = vpop.f32.mrb[96].mxu0 }
 0x1c2   : > { %v838_v39 = vpop.f32.mrb[97].mxu0  ;;  %v910_v23 = vmax.f32 %v836_v38, 0.0 }
 0x1c3   : > { %v840_v40 = vpop.f32.mrb[98].mxu0  ;;  %v3996_v25 = vrot.slane %v838_v39, 1 }
 0x1c4   : > { %v911_v37 = vmax.f32 %v840_v40, 0.0  ;;  %v842_v9 = vpop.f32.mrb[99].mxu0  ;;  %v867_v40 = vmax.f32 %v5843_v13, 0.0  ;;  %v1677_v13 = vshll.u32 %v5845_v14, 16 }
 0x1c5   : > { %v3997_v4 = vrot.slane %v842_v9, 1 }
 0x1c6   : > { %v932_v35 = vpack.c.bf16 %v911_v37, %v910_v23  ;;  %v1665_v23 = vshll.u32 %v5830_v1, 16  ;;  %v6087_v18 = vpack.c.bf16 %v867_v40, %v867_v40 }
 0x1c7   : > { %v6075_v44 = vsel %vm2702_vm0, %v3996_v25, %v3997_v4  ;;  %v1670_v25 = vshll.u32 %v6077_v47, 16 }
 0x1c8   : > { %6900 = vst [vmem:[#allocation32_spill] sm:$0xff] %v6075_v44  ;;  %4733 = vmatmul.mubr.bf16.gmra.mrb[136].mxu0 %v932_v35  ;;  %4828 = vmatprep.mubr.bf16.mxu1 %v932_v35  ;;  %v2131_v55 = vshll.u32 %v932_v35, 16  ;;  %v870_v44 = vmax.f32 %v5860_v29, 0.0  ;;  %v3027_v5 = vrot.slane %v932_v35, 1 }
 0x1c9   : > { %v846_v33 = vpop.f32.mrb[100].mxu0  ;;  %4752 = vmatprep.mubr.bf16.mxu0 %v5830_v1 }
 0x1ca   : > { %v912_v12 = vmax.f32 %v846_v33, 0.0  ;;  %v848_v38 = vpop.f32.mrb[101].mxu0  ;;  %v2133_v37 = vrot.slane %v2131_v55, 1  ;;  %v2129_v33 = vshrl.u32 %v932_v35, 16  ;;  %v6094_v29 = vpack.c.bf16 %v870_v44, %v870_v44 }
 0x1cb   : > { %v3999_v59 = vrot.slane %v848_v38, 1  ;;  %v850_v3 = vpop.f32.mrb[102].mxu0  ;;  %v1667_v38 = vrot.slane %v1665_v23, 1  ;;  %v1663_v35 = vshrl.u32 %v5830_v1, 16  ;;  %v1679_v44 = vrot.slane %v1677_v13, 1 }
 0x1cc   : > { %v1659_v39 = vpack.c.bf16 %v912_v12, %v912_v12  ;;  %v852_v9 = vpop.f32.mrb[103].mxu0  ;;  %v2134_v55 = vor.u32 %v2133_v37, %v2129_v33  ;;  %v913_v40 = vmax.f32 %v850_v3, 0.0  ;;  %v1689_v37 = vshll.u32 %v5854_v27, 16 }
 0x1cd   : > { %v6085_v11 = vsel %vm2702_vm0, %v3997_v4, %v3999_v59  ;;  %v1672_v4 = vrot.slane %v1670_v25, 1  ;;  %v1668_v17 = vor.u32 %v1667_v38, %v1663_v35  ;;  %v873_v3 = vmax.f32 %v5865_v41, 0.0 }
 0x1ce   : > { %6901 = vst [vmem:[#allocation33_spill] sm:$0xff] %v6085_v11  ;;  %v2136_v15 = vshll.u32 %v1659_v39, 16  ;;  %v3028_v45 = vrot.slane %v1659_v39, 1  ;;  %v1675_v25 = vshrl.u32 %v5845_v14, 16  ;;  %v1691_v38 = vrot.slane %v1689_v37, 1 }
 0x1cf   : > { %v1673_v13 = vsel %vm1661_vm1, %v1668_v17, %v1672_v4  ;;  %v1687_v17 = vshrl.u32 %v5854_v27, 16 }
 0x1d0   : > { %v2138_v12 = vrot.slane %v2136_v15, 1  ;;  %4753 = vmatmul.mubr.bf16.vlgmr.msra.gmra.mrb[108].mxu0 %v5845_v14  ;;  %v6092_v9 = vsel %vm2702_vm0, %v3027_v5, %v3028_v45  ;;  %v1682_v45 = vshll.u32 %v6087_v18, 16 }
 0x1d1   : > { %v855_v59 = vpop.f32.mrb[104].mxu0  ;;  %4756 = vmatprep.mubr.bf16.mxu0 %v5854_v27  ;;  %4785 = vmatpush3.bf16.msra.mxu0 %v5782_v50  ;;  %v1694_v50 = vshll.u32 %v6094_v29, 16 }
 0x1d2   : > { %v914_v15 = vmax.f32 %v855_v59, 0.0  ;;  %v857_v39 = vpop.f32.mrb[105].mxu0  ;;  %4786 = vmatprep.subr.bf16.mxu0 %v5790_v51  ;;  %v6101_v23 = vsel %vm1661_vm1, %v2134_v55, %v2138_v12  ;;  %v876_v12 = vmax.f32 %v5891_v6, 0.0  ;;  %v6113_v6 = vpack.c.bf16 %v873_v3, %v873_v3 }
 0x1d3   : > { %v858_v5 = vpop.f32.mrb[106].mxu0  ;;  %v1713_v3 = vshll.u32 %v5882_v63, 16 }
 0x1d4   : > { %v933_v33 = vpack.c.bf16 %v914_v15, %v913_v40  ;;  %v915_v11 = vmax.f32 %v858_v5, 0.0  ;;  %v860_v34 = vpop.f32.mrb[107].mxu0  ;;  %v1684_v40 = vrot.slane %v1682_v45, 1  ;;  %v1696_v5 = vrot.slane %v1694_v50, 1  ;;  %v5550_v50 = vld [vmem:[%s6865_s2 + $0x108] sm:$0xff]  }
 0x1d5   : > { %4787 = vmatpush3.bf16.msra.mxu0 %v5790_v51  ;;  %v1680_v34 = vor.u32 %v1679_v44, %v1675_v25  ;;  %v6119_v4 = vpack.c.bf16 %v876_v12, %v876_v12  ;;  %v879_v12 = vmax.f32 %v5911_v26, 0.0  ;;  %v1699_v26 = vshrl.u32 %v5867_v42, 16 }
 0x1d6   : > { %v1660_v55 = vpack.c.bf16 %v915_v11, %v915_v11  ;;  %4829 = vmatmul.mubr.bf16.gmra.mrb[12].mxu1 %v933_v33  ;;  %4788 = vmatprep.subr.bf16.mxu0 %v5798_v53  ;;  %v2402_v59 = vshll.u32 %v933_v33, 16  ;;  %v2400_v35 = vshrl.u32 %v933_v33, 16  ;;  %v3291_v51 = vrot.slane %v933_v33, 1 }
 0x1d7   : > { %4848 = vmatprep.mubr.bf16.mxu1 %v1673_v13  ;;  %v1701_v11 = vshll.u32 %v5867_v42, 16  ;;  %v1692_v33 = vor.u32 %v1691_v38, %v1687_v17  ;;  %v882_v38 = vmax.f32 %v5935_v58, 0.0  ;;  %v5551_v58 = vld [vmem:[%s6865_s2 + $0x110] sm:$0xff]   ;;  %v1737_v17 = vshll.u32 %v5928_v52, 16 }
 0x1d8   : > { %v2407_v15 = vshll.u32 %v1660_v55, 16  ;;  %v3292_v41 = vrot.slane %v1660_v55, 1  ;;  %4757 = vmatmul.mubr.bf16.gmra.mrb[112].mxu0 %v5867_v42  ;;  %v2404_v39 = vrot.slane %v2402_v59, 1  ;;  %v6135_v55 = vsel %vm1661_vm1, %v1680_v34, %v1684_v40 }
 0x1d9   : > { %4760 = vmatprep.mubr.bf16.mxu0 %v5882_v63  ;;  %4789 = vmatpush3.bf16.msra.mxu0 %v5798_v53  ;;  %v1706_v53 = vshll.u32 %v6113_v6, 16  ;;  %v1703_v13 = vrot.slane %v1701_v11, 1  ;;  %v1718_v59 = vshll.u32 %v6119_v4, 16  ;;  %v6152_v34 = vpack.c.bf16 %v879_v12, %v879_v12  ;;  %v5552_v11 = vld [vmem:[%s6865_s2 + $0x118] sm:$0xff]  }
 0x1da   : > { %v2409_v45 = vrot.slane %v2407_v15, 1  ;;  %4790 = vmatprep.subr.bf16.mxu0 %v5806_v54  ;;  %v2405_v44 = vor.u32 %v2404_v39, %v2400_v35  ;;  %v6123_v37 = vsel %vm2702_vm0, %v3291_v51, %v3292_v41  ;;  %v6142_v35 = vsel %vm1661_vm1, %v1692_v33, %v1696_v5 }
 0x1db   : > { %6902 = vst [vmem:[#allocation34_spill] sm:$0xff] %v6123_v37  ;;  %v1708_v40 = vrot.slane %v1706_v53, 1  ;;  %v1704_v15 = vor.u32 %v1703_v13, %v1699_v26  ;;  %v1720_v41 = vrot.slane %v1718_v59, 1  ;;  %v6157_v39 = vpack.c.bf16 %v882_v38, %v882_v38 }
 0x1dc   : > { %v6130_v25 = vsel %vm1661_vm1, %v2405_v44, %v2409_v45  ;;  %v1711_v51 = vshrl.u32 %v5882_v63, 16  ;;  %v1730_v45 = vshll.u32 %v6152_v34, 16  ;;  %v1739_v12 = vrot.slane %v1737_v17, 1 }
 0x1dd   : > { %4791 = vmatpush3.bf16.msra.mxu0 %v5806_v54  ;;  %v1715_v54 = vrot.slane %v1713_v3, 1  ;;  %v6168_v44 = vsel %vm1661_vm1, %v1704_v15, %v1708_v40  ;;  %v888_v3 = vmax.f32 %v5957_v46, 0.0  ;;  %v1749_v38 = vshll.u32 %v5942_v20, 16 }
 0x1de   : > { %4849 = vmatmul.mubr.bf16.vlgmr.msra.gmra.mrb[16].mxu1 %v6135_v55  ;;  %4792 = vmatprep.subr.bf16.mxu0 %v5814_v56  ;;  %v1732_v46 = vrot.slane %v1730_v45, 1  ;;  %v1761_v15 = vshll.u32 %v5951_v43, 16 }
 0x1df   : > { %4881 = vmatpush3.bf16.msra.mxu1 %v6046_v62  ;;  %4852 = vmatprep.mubr.bf16.mxu1 %v6142_v35  ;;  %v1725_v62 = vshll.u32 %v5913_v30, 16  ;;  %v1716_v5 = vor.u32 %v1715_v54, %v1711_v51  ;;  %v6189_v54 = vpack.c.bf16 %v888_v3, %v888_v3  ;;  %v1773_v3 = vshll.u32 %v5964_v21, 16 }
 0x1e0   : > { %4761 = vmatmul.mubr.bf16.gmra.mrb[116].mxu0 %v5913_v30  ;;  %4882 = vmatprep.subr.bf16.mxu1 %v5550_v50 }
 0x1e1   : > { %4764 = vmatprep.mubr.bf16.mxu0 %v5928_v52  ;;  %4793 = vmatpush3.bf16.msra.mxu0 %v5814_v56  ;;  %v885_v56 = vmax.f32 %v5940_v19, 0.0  ;;  %v1727_v33 = vrot.slane %v1725_v62, 1  ;;  %v6175_v53 = vsel %vm1661_vm1, %v1716_v5, %v1720_v41  ;;  %v1723_v19 = vshrl.u32 %v5913_v30, 16  ;;  %v5554_v62 = vld [vmem:[%s6865_s2 + $0x128] sm:$0xff]  }
 0x1e2   : > { %4794 = vmatprep.subr.bf16.mxu0 %v5821_v57  ;;  %v1751_v5 = vrot.slane %v1749_v38, 1  ;;  %v1766_v17 = vshll.u32 %v6189_v54, 16  ;;  %v5556_v38 = vld [vmem:[%s6865_s2 + $0x138] sm:$0xff]  }
 0x1e3   : > { %4883 = vmatpush3.bf16.msra.mxu1 %v5550_v50  ;;  %v1742_v50 = vshll.u32 %v6157_v39, 16  ;;  %v6184_v13 = vpack.c.bf16 %v885_v56, %v885_v56  ;;  %v1728_v59 = vor.u32 %v1727_v33, %v1723_v19  ;;  %v1747_v56 = vshrl.u32 %v5942_v20, 16 }
 0x1e4   : > { %4884 = vmatprep.subr.bf16.mxu1 %v5551_v58  ;;  %v1768_v19 = vrot.slane %v1766_v17, 1  ;;  %v6243_v17 = vld [vmem:[%s6865_s2 + $0x1c0] sm:$0xff]  }
 0x1e5   : > { %4795 = vmatpush3.bf16.msra.mxu0 %v5821_v57  ;;  %v5553_v57 = vld [vmem:[%s6865_s2 + $0x120] sm:$0xff]   ;;  %v1744_v26 = vrot.slane %v1742_v50, 1  ;;  %v1754_v41 = vshll.u32 %v6184_v13, 16  ;;  %v6200_v51 = vsel %vm1661_vm1, %v1728_v59, %v1732_v46  ;;  %v1752_v50 = vor.u32 %v1751_v5, %v1747_v56 }
 0x1e6   : > { %4853 = vmatmul.mubr.bf16.gmra.mrb[20].mxu1 %v6168_v44  ;;  %4796 = vmatprep.subr.bf16.mxu0 %v5828_v0  ;;  %v1785_v59 = vshll.u32 %v5973_v60, 16  ;;  %v1771_v5 = vshrl.u32 %v5964_v21, 16 }
 0x1e7   : > { %4856 = vmatprep.mubr.bf16.mxu1 %v6175_v53  ;;  %4885 = vmatpush3.bf16.msra.mxu1 %v5551_v58  ;;  %v1735_v58 = vshrl.u32 %v5928_v52, 16  ;;  %v1756_v33 = vrot.slane %v1754_v41, 1 }
 0x1e8   : > { %4765 = vmatmul.mubr.bf16.gmra.mrb[120].mxu0 %v5942_v20  ;;  %4886 = vmatprep.subr.bf16.mxu1 %v5552_v11 }
 0x1e9   : > { %4768 = vmatprep.mubr.bf16.mxu0 %v5951_v43  ;;  %4797 = vmatpush3.bf16.msra.mxu0 %v5828_v0  ;;  %v1740_v40 = vor.u32 %v1739_v12, %v1735_v58  ;;  %v891_v0 = vmax.f32 %v5962_v16, 0.0  ;;  %v1763_v16 = vrot.slane %v1761_v15, 1  ;;  %v897_v58 = vmax.f32 %v5985_v48, 0.0 }
 0x1ea   : > { %4798 = vmatprep.subr.bf16.mxu0 %v5837_v2  ;;  %v1775_v15 = vrot.slane %v1773_v3, 1  ;;  %v1787_v48 = vrot.slane %v1785_v59, 1 }
 0x1eb   : > { %4887 = vmatpush3.bf16.msra.mxu1 %v5552_v11  ;;  %v894_v11 = vmax.f32 %v5980_v7, 0.0  ;;  %v6207_v45 = vsel %vm1661_vm1, %v1740_v40, %v1744_v26  ;;  %v6215_v7 = vpack.c.bf16 %v891_v0, %v891_v0  ;;  %v6229_v40 = vsel %vm1661_vm1, %v1752_v50, %v1756_v33 }
 0x1ec   : > { %4888 = vmatprep.subr.bf16.mxu1 %v5553_v57  ;;  %v1776_v56 = vor.u32 %v1775_v15, %v1771_v5  ;;  %v906_v15 = vmax.f32 %v6056_v8, 0.0  ;;  %v1821_v8 = vshll.u32 %v6030_v61, 16 }
 0x1ed   : > { %4799 = vmatpush3.bf16.msra.mxu0 %v5837_v2  ;;  %v5555_v2 = vld [vmem:[%s6865_s2 + $0x130] sm:$0xff]   ;;  %v6219_v12 = vpack.c.bf16 %v894_v11, %v894_v11  ;;  %v1778_v26 = vshll.u32 %v6215_v7, 16  ;;  %v6245_v11 = vpack.c.bf16 %v897_v58, %v897_v58 }
 0x1ee   : > { %4857 = vmatmul.mubr.bf16.gmra.mrb[24].mxu1 %v6200_v51 }
 0x1ef   : > { %4860 = vmatprep.mubr.bf16.mxu1 %v6207_v45  ;;  %4889 = vmatpush3.bf16.msra.mxu1 %v5553_v57  ;;  %v1759_v57 = vshrl.u32 %v5951_v43, 16  ;;  %v1790_v41 = vshll.u32 %v6219_v12, 16 }
 0x1f0   : > { %4769 = vmatmul.mubr.bf16.gmra.mrb[124].mxu0 %v5964_v21  ;;  %4890 = vmatprep.subr.bf16.mxu1 %v5554_v62 }
 0x1f1   : > { %4772 = vmatprep.mubr.bf16.mxu0 %v5973_v60  ;;  %v1764_v46 = vor.u32 %v1763_v16, %v1759_v57  ;;  %v1797_v16 = vshll.u32 %v5987_v49, 16  ;;  %v1792_v33 = vrot.slane %v1790_v41, 1  ;;  %v1802_v57 = vshll.u32 %v6245_v11, 16 }
 0x1f2   : > { %v1795_v41 = vshrl.u32 %v5987_v49, 16 }
 0x1f3   : > { %4891 = vmatpush3.bf16.msra.mxu1 %v5554_v62  ;;  %v900_v62 = vmax.f32 %v6017_v10, 0.0  ;;  %v6235_v0 = vsel %vm1661_vm1, %v1764_v46, %v1768_v19  ;;  %v1780_v10 = vrot.slane %v1778_v26, 1  ;;  %v1809_v19 = vshll.u32 %v6007_v31, 16 }
 0x1f4   : > { %4892 = vmatprep.subr.bf16.mxu1 %v5555_v2  ;;  %v903_v46 = vmax.f32 %v6028_v24, 0.0  ;;  %v1799_v26 = vrot.slane %v1797_v16, 1  ;;  %v1807_v16 = vshrl.u32 %v6007_v31, 16 }
 0x1f5   : > { %v6249_v50 = vpack.c.bf16 %v900_v62, %v900_v62  ;;  %v6257_v59 = vsel %vm1661_vm1, %v1776_v56, %v1780_v10  ;;  %v1811_v24 = vrot.slane %v1809_v19, 1  ;;  %v1804_v62 = vrot.slane %v1802_v57, 1 }
 0x1f6   : > { %4861 = vmatmul.mubr.bf16.gmra.mrb[28].mxu1 %v6229_v40  ;;  %v6268_v5 = vpack.c.bf16 %v903_v46, %v903_v46  ;;  %v6272_v56 = vpack.c.bf16 %v906_v15, %v906_v15  ;;  %v909_v19 = vmax.f32 %v6061_v22, 0.0  ;;  %v1823_v46 = vrot.slane %v1821_v8, 1 }
 0x1f7   : > { %4864 = vmatprep.mubr.bf16.mxu1 %v6235_v0  ;;  %4893 = vmatpush3.bf16.msra.mxu1 %v5555_v2  ;;  %v1783_v2 = vshrl.u32 %v5973_v60, 16  ;;  %v1814_v58 = vshll.u32 %v6249_v50, 16  ;;  %v1819_v15 = vshrl.u32 %v6030_v61, 16 }
 0x1f8   : > { %4773 = vmatmul.mubr.bf16.gmra.mrb[128].mxu0 %v5987_v49  ;;  %4894 = vmatprep.subr.bf16.mxu1 %v5556_v38  ;;  %v6289_v22 = vpack.c.bf16 %v909_v19, %v909_v19 }
 0x1f9   : > { %4776 = vmatprep.mubr.bf16.mxu0 %v6007_v31  ;;  %v1788_v3 = vor.u32 %v1787_v48, %v1783_v2  ;;  %v1800_v48 = vor.u32 %v1799_v26, %v1795_v41  ;;  %v1816_v10 = vrot.slane %v1814_v58, 1  ;;  %v1833_v2 = vshll.u32 %v6049_v32, 16 }
 0x1fa   : > { %v1838_v26 = vshll.u32 %v6272_v56, 16 }
 0x1fb   : > { %4895 = vmatpush3.bf16.msra.mxu1 %v5556_v38  ;;  %v6263_v38 = vsel %vm1661_vm1, %v1788_v3, %v1792_v33  ;;  %v1812_v33 = vor.u32 %v1811_v24, %v1807_v16  ;;  %v1826_v3 = vshll.u32 %v6268_v5, 16  ;;  %v6279_v57 = vsel %vm1661_vm1, %v1800_v48, %v1804_v62 }
 0x1fc   : > { %4928 = vmatprep.subr.bf16.mxu1 %v6243_v17  ;;  %v1835_v41 = vrot.slane %v1833_v2, 1  ;;  %v1824_v62 = vor.u32 %v1823_v46, %v1819_v15  ;;  %v1845_v48 = vshll.u32 %v6063_v36, 16  ;;  %v1840_v8 = vrot.slane %v1838_v26, 1  ;;  %v5558_v15 = vld [vmem:[%s6865_s2 + $0x1c8] sm:$0xff]  }
 0x1fd   : > { %v6284_v58 = vsel %vm1661_vm1, %v1812_v33, %v1816_v10  ;;  %v1828_v24 = vrot.slane %v1826_v3, 1  ;;  %v1831_v16 = vshrl.u32 %v6049_v32, 16  ;;  %v1850_v33 = vshll.u32 %v6289_v22, 16 }
 0x1fe   : > { %4865 = vmatmul.mubr.bf16.gmra.mrb[0].mxu1 %v6257_v59  ;;  %v1847_v37 = vrot.slane %v1845_v48, 1  ;;  %v1843_v3 = vshrl.u32 %v6063_v36, 16  ;;  %v5565_v48 = vld [vmem:[%s6865_s2 + $0x80] sm:$0xff]  }
 0x1ff   : > { %4868 = vmatprep.mubr.bf16.mxu1 %v6263_v38  ;;  %v1836_v10 = vor.u32 %v1835_v41, %v1831_v16  ;;  %v6296_v28 = vsel %vm1661_vm1, %v1824_v62, %v1828_v24  ;;  %v1852_v19 = vrot.slane %v1850_v33, 1  ;;  %v5562_v41 = vld [vmem:[%s6865_s2 + $0x1e8] sm:$0xff]   ;;  %v5563_v24 = vld [vmem:[%s6865_s2 + $0x1f0] sm:$0xff]   ;;  %v5564_v62 = vld [vmem:[%s6865_s2 + $0x1f8] sm:$0xff]  }
 0x200   : > { %4777 = vmatmul.mubr.bf16.gmra.mrb[132].mxu0 %v6030_v61  ;;  %v1848_v46 = vor.u32 %v1847_v37, %v1843_v3  ;;  %v5559_v37 = vld [vmem:[%s6865_s2 + $0x1d0] sm:$0xff]   ;;  %v5576_v33 = vld [vmem:[%s6865_s2 + $0x158] sm:$0xff]  }
 0x201   : > { %4780 = vmatprep.mubr.bf16.mxu0 %v6049_v32  ;;  %v6300_v2 = vsel %vm1661_vm1, %v1836_v10, %v1840_v8  ;;  %v5566_v8 = vld [vmem:[%s6865_s2 + $0x88] sm:$0xff]   ;;  %v5567_v16 = vld [vmem:[%s6865_s2 + $0x90] sm:$0xff]   ;;  %v2709_v10 = vrot.slane %v5854_v27, 1 }
 0x202   : > { %v6307_v26 = vsel %vm1661_vm1, %v1848_v46, %v1852_v19  ;;  %v2721_v19 = vrot.slane %v5928_v52, 1  ;;  %v5578_v46 = vld [vmem:[%s6865_s2 + $0x168] sm:$0xff]  }
 0x206   : > { %4869 = vmatmul.mubr.bf16.gmra.mrb[4].mxu1 %v6279_v57 }
 0x207   : > { %4872 = vmatprep.mubr.bf16.mxu1 %v6284_v58 }
 0x208   : > { %4781 = vmatmul.mubr.bf16.gmra.mrb[136].mxu0 %v6063_v36 }
 0x209   : > { %4800 = vmatprep.mubr.bf16.mxu0 %v5854_v27  ;;  %v2716_v27 = vrot.slane %v6119_v4, 1  ;;  %v2718_v4 = vrot.slane %v5913_v30, 1 }
 0x20e   : > { %4873 = vmatmul.mubr.bf16.gmra.mrb[8].mxu1 %v6296_v28 }
 0x20f   : > { %4876 = vmatprep.mubr.bf16.mxu1 %v6300_v2 }
 0x210   : > { %4801 = vmatmul.mubr.bf16.vlgmr.msra.gmra.mrb[108].mxu0 %v5867_v42 }
 0x211   : > { %4804 = vmatprep.mubr.bf16.mxu0 %v5882_v63 }
 0x216   : > { %4877 = vmatmul.mubr.bf16.gmra.mrb[12].mxu1 %v6307_v26 }
 0x217   : > { %4896 = vmatprep.mubr.bf16.mxu1 %v6135_v55  ;;  %v5560_v55 = vld [vmem:[%s6865_s2 + $0x1d8] sm:$0xff]  }
 0x218   : > { %4805 = vmatmul.mubr.bf16.gmra.mrb[112].mxu0 %v5913_v30  ;;  %v5579_v30 = vld [vmem:[%s6865_s2 + $0x170] sm:$0xff]  }
 0x219   : > { %4808 = vmatprep.mubr.bf16.mxu0 %v5928_v52  ;;  %v2725_v52 = vrot.slane %v6184_v13, 1  ;;  %v2734_v13 = vrot.slane %v6219_v12, 1  ;;  %v2740_v12 = vrot.slane %v6249_v50, 1  ;;  %v2746_v50 = vrot.slane %v6272_v56, 1 }
 0x21e   : > { %4897 = vmatmul.mubr.bf16.vlgmr.msra.gmra.mrb[16].mxu1 %v6142_v35 }
 0x21f   : > { %4929 = vmatpush3.bf16.msra.mxu1 %v6243_v17  ;;  %4900 = vmatprep.mubr.bf16.mxu1 %v6168_v44  ;;  %v5561_v17 = vld [vmem:[%s6865_s2 + $0x1e0] sm:$0xff]  }
 0x220   : > { %4809 = vmatmul.mubr.bf16.gmra.mrb[116].mxu0 %v5942_v20  ;;  %4930 = vmatprep.subr.bf16.mxu1 %v5558_v15 }
 0x221   : > { %4812 = vmatprep.mubr.bf16.mxu0 %v5951_v43 }
 0x223   : > { %4931 = vmatpush3.bf16.msra.mxu1 %v5558_v15 }
 0x224   : > { %4932 = vmatprep.subr.bf16.mxu1 %v5559_v37 }
 0x226   : > { %4901 = vmatmul.mubr.bf16.gmra.mrb[20].mxu1 %v6175_v53 }
 0x227   : > { %4904 = vmatprep.mubr.bf16.mxu1 %v6200_v51  ;;  %4933 = vmatpush3.bf16.msra.mxu1 %v5559_v37  ;;  %v2727_v37 = vrot.slane %v5951_v43, 1  ;;  %v2731_v43 = vrot.slane %v6215_v7, 1  ;;  %v2737_v7 = vrot.slane %v6245_v11, 1 }
 0x228   : > { %4813 = vmatmul.mubr.bf16.gmra.mrb[120].mxu0 %v5964_v21  ;;  %4934 = vmatprep.subr.bf16.mxu1 %v5560_v55 }
 0x22b   : > { %4935 = vmatpush3.bf16.msra.mxu1 %v5560_v55  ;;  %v5580_v55 = vld [vmem:[%s6865_s2 + $0x178] sm:$0xff]  }
 0x22c   : > { %4936 = vmatprep.subr.bf16.mxu1 %v5561_v17 }
 0x22e   : > { %4905 = vmatmul.mubr.bf16.gmra.mrb[24].mxu1 %v6207_v45 }
 0x22f   : > { %4908 = vmatprep.mubr.bf16.mxu1 %v6229_v40  ;;  %4937 = vmatpush3.bf16.msra.mxu1 %v5561_v17 }
 0x230   : > { %4938 = vmatprep.subr.bf16.mxu1 %v5562_v41 }
 0x233   : > { %4939 = vmatpush3.bf16.msra.mxu1 %v5562_v41 }
 0x234   : > { %4940 = vmatprep.subr.bf16.mxu1 %v5563_v24 }
 0x236   : > { %4909 = vmatmul.mubr.bf16.gmra.mrb[28].mxu1 %v6235_v0 }
 0x237   : > { %4912 = vmatprep.mubr.bf16.mxu1 %v6257_v59  ;;  %4941 = vmatpush3.bf16.msra.mxu1 %v5563_v24  ;;  %v2733_v24 = vrot.slane %v5973_v60, 1 }
 0x238   : > { %4942 = vmatprep.subr.bf16.mxu1 %v5564_v62 }
 0x23b   : > { %4943 = vmatpush3.bf16.msra.mxu1 %v5564_v62 }
 0x23c   : > { %4976 = vmatprep.subr.bf16.mxu1 %v5565_v48 }
 0x23e   : > { %4913 = vmatmul.mubr.bf16.gmra.mrb[0].mxu1 %v6263_v38 }
 0x23f   : > { %4916 = vmatprep.mubr.bf16.mxu1 %v6279_v57 }
 0x246   : > { %4917 = vmatmul.mubr.bf16.gmra.mrb[4].mxu1 %v6284_v58 }
 0x247   : > { %4920 = vmatprep.mubr.bf16.mxu1 %v6296_v28 }
 0x24e   : > { %4921 = vmatmul.mubr.bf16.gmra.mrb[8].mxu1 %v6300_v2 }
 0x24f   : > { %4924 = vmatprep.mubr.bf16.mxu1 %v6307_v26 }
 0x256   : > { %4925 = vmatmul.mubr.bf16.gmra.mrb[12].mxu1 %v6101_v23 }
 0x257   : > { %4944 = vmatprep.mubr.bf16.mxu1 %v6142_v35  ;;  %v5568_v35 = vld [vmem:[%s6865_s2 + $0x98] sm:$0xff]  }
 0x25e   : > { %4945 = vmatmul.mubr.bf16.vlgmr.msra.gmra.mrb[16].mxu1 %v6168_v44  ;;  %v5569_v44 = vld [vmem:[%s6865_s2 + $0xa0] sm:$0xff]  }
 0x25f   : > { %4977 = vmatpush3.bf16.msra.mxu1 %v5565_v48  ;;  %4948 = vmatprep.mubr.bf16.mxu1 %v6175_v53  ;;  %v5570_v53 = vld [vmem:[%s6865_s2 + $0xa8] sm:$0xff]   ;;  %v6480_v48 = vsel %vm2702_vm0, %v2733_v24, %v2734_v13 }
 0x260   : > { %4978 = vmatprep.subr.bf16.mxu1 %v5566_v8 }
 0x263   : > { %4979 = vmatpush3.bf16.msra.mxu1 %v5566_v8 }
 0x264   : > { %4980 = vmatprep.subr.bf16.mxu1 %v5567_v16 }
 0x266   : > { %4949 = vmatmul.mubr.bf16.gmra.mrb[20].mxu1 %v6200_v51  ;;  %v5571_v51 = vld [vmem:[%s6865_s2 + $0xb0] sm:$0xff]  }
 0x267   : > { %4952 = vmatprep.mubr.bf16.mxu1 %v6207_v45  ;;  %4981 = vmatpush3.bf16.msra.mxu1 %v5567_v16  ;;  %v5572_v45 = vld [vmem:[%s6865_s2 + $0xb8] sm:$0xff]   ;;  %v2739_v16 = vrot.slane %v6007_v31, 1  ;;  %v2742_v31 = vrot.slane %v6030_v61, 1  ;;  %v2749_v61 = vrot.slane %v6289_v22, 1  ;;  %v6554_v22 = vld [vmem:[%s6867_s4 + $0x10] sm:$0xff]  }
 0x268   : > { %4982 = vmatprep.subr.bf16.mxu1 %v5568_v35 }
 0x269   : > { %v6500_v11 = vsel %vm2702_vm0, %v2739_v16, %v2740_v12 }
 0x26b   : > { %4983 = vmatpush3.bf16.msra.mxu1 %v5568_v35 }
 0x26c   : > { %4984 = vmatprep.subr.bf16.mxu1 %v5569_v44 }
 0x26e   : > { %4953 = vmatmul.mubr.bf16.gmra.mrb[24].mxu1 %v6229_v40  ;;  %v5573_v40 = vld [vmem:[%s6865_s2 + $0x140] sm:$0xff]  }
 0x26f   : > { %4956 = vmatprep.mubr.bf16.mxu1 %v6235_v0  ;;  %4985 = vmatpush3.bf16.msra.mxu1 %v5569_v44  ;;  %v2704_v0 = vrot.slane %v6077_v47, 1 }
 0x270   : > { %4986 = vmatprep.subr.bf16.mxu1 %v5570_v53 }
 0x273   : > { %4987 = vmatpush3.bf16.msra.mxu1 %v5570_v53 }
 0x274   : > { %4988 = vmatprep.subr.bf16.mxu1 %v5571_v51 }
 0x276   : > { %4957 = vmatmul.mubr.bf16.gmra.mrb[28].mxu1 %v6257_v59  ;;  %v2703_v59 = vrot.slane %v5830_v1, 1 }
 0x277   : > { %4960 = vmatprep.mubr.bf16.mxu1 %v6263_v38  ;;  %4989 = vmatpush3.bf16.msra.mxu1 %v5571_v51 }
 0x278   : > { %4990 = vmatprep.subr.bf16.mxu1 %v5572_v45  ;;  %v2705_v38 = vsel %vm2702_vm0, %v2703_v59, %v2704_v0 }
 0x27b   : > { %4991 = vmatpush3.bf16.msra.mxu1 %v5572_v45 }
 0x27c   : > { %5024 = vmatprep.subr.bf16.mxu1 %v5573_v40 }
 0x27e   : > { %4961 = vmatmul.mubr.bf16.gmra.mrb[0].mxu1 %v6279_v57  ;;  %v2707_v57 = vrot.slane %v6087_v18, 1  ;;  %v2713_v18 = vrot.slane %v6113_v6, 1  ;;  %v2722_v6 = vrot.slane %v6157_v39, 1  ;;  %v2724_v39 = vrot.slane %v5942_v20, 1  ;;  %v5581_v20 = vld [vmem:[%s6865_s2 + $0x200] sm:$0xff]  }
 0x27f   : > { %4964 = vmatprep.mubr.bf16.mxu1 %v6284_v58  ;;  %v2710_v58 = vrot.slane %v6094_v29, 1  ;;  %v2712_v29 = vrot.slane %v5867_v42, 1  ;;  %v5577_v42 = vld [vmem:[%s6865_s2 + $0x160] sm:$0xff]  }
 0x280   : > { %v6447_v15 = vsel %vm2702_vm0, %v2721_v19, %v2722_v6  ;;  %v6461_v17 = vsel %vm2702_vm0, %v2724_v39, %v2725_v52  ;;  %v5586_v39 = vld [vmem:[%s6865_s2 + $0x228] sm:$0xff]  }
 0x281   : > { %v6411_v1 = vsel %vm2702_vm0, %v2709_v10, %v2710_v58 }
 0x286   : > { %4965 = vmatmul.mubr.bf16.gmra.mrb[4].mxu1 %v6296_v28  ;;  %v2706_v28 = vrot.slane %v5845_v14, 1  ;;  %v5575_v14 = vld [vmem:[%s6865_s2 + $0x150] sm:$0xff]  }
 0x287   : > { %4968 = vmatprep.mubr.bf16.mxu1 %v6300_v2  ;;  %v6425_v2 = vsel %vm2702_vm0, %v2712_v29, %v2713_v18 }
 0x288   : > { %v6407_v47 = vsel %vm2702_vm0, %v2706_v28, %v2707_v57 }
 0x28e   : > { %4969 = vmatmul.mubr.bf16.gmra.mrb[8].mxu1 %v6307_v26 }
 0x28f   : > { %4972 = vmatprep.mubr.bf16.mxu1 %v6101_v23  ;;  %v5574_v23 = vld [vmem:[%s6865_s2 + $0x148] sm:$0xff]  }
 0x296   : > { %4973 = vmatmul.mubr.bf16.gmra.mrb[12].mxu1 %v6130_v25  ;;  %v2715_v25 = vrot.slane %v5882_v63, 1  ;;  %v2719_v63 = vrot.slane %v6152_v34, 1  ;;  %v2728_v34 = vrot.slane %v6189_v54, 1  ;;  %v2730_v54 = vrot.slane %v5964_v21, 1 }
 0x297   : > { %4992 = vmatprep.mubr.bf16.mxu1 %v2705_v38  ;;  %v2736_v21 = vrot.slane %v5987_v49, 1  ;;  %v2743_v49 = vrot.slane %v6268_v5, 1 }
 0x298   : > { %v6429_v3 = vsel %vm2702_vm0, %v2715_v25, %v2716_v27  ;;  %v6443_v26 = vsel %vm2702_vm0, %v2718_v4, %v2719_v63  ;;  %v6465_v41 = vsel %vm2702_vm0, %v2727_v37, %v2728_v34  ;;  %v6476_v62 = vsel %vm2702_vm0, %v2730_v54, %v2731_v43  ;;  %v5582_v27 = vld [vmem:[%s6865_s2 + $0x208] sm:$0xff]   ;;  %v6573_v25 = vld [vmem:[%s6867_s4 + $0x18] sm:$0xff]  }
 0x299   : > { %v6494_v44 = vsel %vm2702_vm0, %v2736_v21, %v2737_v7  ;;  %v6514_v59 = vsel %vm2702_vm0, %v2742_v31, %v2743_v49  ;;  %v5584_v4 = vld [vmem:[%s6865_s2 + $0x218] sm:$0xff]  }
 0x29a   : > { %v5588_v54 = vld [vmem:[%s6865_s2 + $0x238] sm:$0xff]  }
 0x29e   : > { %4993 = vmatmul.mubr.bf16.vlgmr.msra.gmra.mrb[16].mxu1 %v6407_v47 }
 0x29f   : > { %5025 = vmatpush3.bf16.msra.mxu1 %v5573_v40  ;;  %4996 = vmatprep.mubr.bf16.mxu1 %v6411_v1  ;;  %v2745_v40 = vrot.slane %v6049_v32, 1  ;;  %v2748_v32 = vrot.slane %v6063_v36, 1  ;;  %v6545_v36 = vld [vmem:[%s6867_s4 + $0x8] sm:$0xff]  }
 0x2a0   : > { %5026 = vmatprep.subr.bf16.mxu1 %v5574_v23 }
 0x2a1   : > { %v6520_v5 = vsel %vm2702_vm0, %v2745_v40, %v2746_v50  ;;  %v6532_v28 = vsel %vm2702_vm0, %v2748_v32, %v2749_v61 }
 0x2a3   : > { %5027 = vmatpush3.bf16.msra.mxu1 %v5574_v23  ;;  %v6540_v23 = vld [vmem:[%s6867_s4] sm:$0xff]  }
 0x2a4   : > { %5028 = vmatprep.subr.bf16.mxu1 %v5575_v14  ;;  %5120 = vmatprep.subr.bf16.mxu0 %v6540_v23 }
 0x2a5   : > { %5121 = vmatpush3.bf16.msra.mxu0 %v6540_v23 }
 0x2a6   : > { %4997 = vmatmul.mubr.bf16.gmra.mrb[20].mxu1 %v6425_v2  ;;  %5122 = vmatprep.subr.bf16.mxu0 %v6545_v36 }
 0x2a7   : > { %5000 = vmatprep.mubr.bf16.mxu1 %v6429_v3  ;;  %5029 = vmatpush3.bf16.msra.mxu1 %v5575_v14 }
 0x2a8   : > { %5030 = vmatprep.subr.bf16.mxu1 %v5576_v33 }
 0x2a9   : > { %5123 = vmatpush3.bf16.msra.mxu0 %v6545_v36 }
 0x2aa   : > { %5124 = vmatprep.subr.bf16.mxu0 %v6554_v22 }
 0x2ab   : > { %5031 = vmatpush3.bf16.msra.mxu1 %v5576_v33  ;;  %v5583_v33 = vld [vmem:[%s6865_s2 + $0x210] sm:$0xff]  }
 0x2ac   : > { %5032 = vmatprep.subr.bf16.mxu1 %v5577_v42 }
 0x2ad   : > { %5125 = vmatpush3.bf16.msra.mxu0 %v6554_v22 }
 0x2ae   : > { %5001 = vmatmul.mubr.bf16.gmra.mrb[24].mxu1 %v6443_v26  ;;  %5126 = vmatprep.subr.bf16.mxu0 %v6573_v25 }
 0x2af   : > { %5004 = vmatprep.mubr.bf16.mxu1 %v6447_v15  ;;  %5033 = vmatpush3.bf16.msra.mxu1 %v5577_v42  ;;  %v6584_v42 = vld [vmem:[%s6867_s4 + $0x20] sm:$0xff]  }
 0x2b0   : > { %5034 = vmatprep.subr.bf16.mxu1 %v5578_v46 }
 0x2b1   : > { %5127 = vmatpush3.bf16.msra.mxu0 %v6573_v25 }
 0x2b2   : > { %5128 = vmatprep.subr.bf16.mxu0 %v6584_v42 }
 0x2b3   : > { %5035 = vmatpush3.bf16.msra.mxu1 %v5578_v46 }
 0x2b4   : > { %5036 = vmatprep.subr.bf16.mxu1 %v5579_v30 }
 0x2b5   : > { %5129 = vmatpush3.bf16.msra.mxu0 %v6584_v42 }
 0x2b6   : > { %5005 = vmatmul.mubr.bf16.gmra.mrb[28].mxu1 %v6461_v17 }
 0x2b7   : > { %5008 = vmatprep.mubr.bf16.mxu1 %v6465_v41  ;;  %5037 = vmatpush3.bf16.msra.mxu1 %v5579_v30  ;;  %v5585_v30 = vld [vmem:[%s6865_s2 + $0x220] sm:$0xff]  }
 0x2b8   : > { %5038 = vmatprep.subr.bf16.mxu1 %v5580_v55 }
 0x2bb   : > { %5039 = vmatpush3.bf16.msra.mxu1 %v5580_v55 }
 0x2bc   : > { %5072 = vmatprep.subr.bf16.mxu1 %v5581_v20 }
 0x2be   : > { %5009 = vmatmul.mubr.bf16.gmra.mrb[0].mxu1 %v6476_v62 }
 0x2bf   : > { %5012 = vmatprep.mubr.bf16.mxu1 %v6480_v48 }
 0x2c3   : > { %v6485_v8 = vpop.f32.mrb[124].mxu0 }
 0x2c4   : > { %v6488_v60 = vpop.f32.mrb[125].mxu0 }
 0x2c5   : > { %v6491_v35 = vpop.f32.mrb[126].mxu0 }
 0x2c6   : > { %v6496_v53 = vpop.f32.mrb[127].mxu0  ;;  %5013 = vmatmul.mubr.bf16.gmra.mrb[4].mxu1 %v6494_v44 }
 0x2c7   : > { %5016 = vmatprep.mubr.bf16.mxu1 %v6500_v11 }
 0x2cb   : > { %v6505_v51 = vpop.f32.mrb[128].mxu0 }
 0x2cc   : > { %v6508_v45 = vpop.f32.mrb[129].mxu0 }
 0x2cd   : > { %v6511_v0 = vpop.f32.mrb[130].mxu0 }
 0x2ce   : > { %v6516_v38 = vpop.f32.mrb[131].mxu0  ;;  %5017 = vmatmul.mubr.bf16.gmra.mrb[8].mxu1 %v6514_v59 }
 0x2cf   : > { %5020 = vmatprep.mubr.bf16.mxu1 %v6520_v5 }
 0x2d3   : > { %v6524_v56 = vpop.f32.mrb[132].mxu0 }
 0x2d4   : > { %v6527_v57 = vpop.f32.mrb[133].mxu0 }
 0x2d5   : > { %v6529_v58 = vpop.f32.mrb[134].mxu0 }
 0x2d6   : > { %v6534_v10 = vpop.f32.mrb[135].mxu0  ;;  %5021 = vmatmul.mubr.bf16.gmra.mrb[12].mxu1 %v6532_v28 }
 0x2d7   : > { %5040 = vmatprep.mubr.bf16.mxu1 %v6407_v47 }
 0x2db   : > { %v6556_v14 = vpop.f32.mrb[136].mxu0 }
 0x2dc   : > { %v6558_v18 = vpop.f32.mrb[137].mxu0 }
 0x2dd   : > { %v6563_v47 = vpop.f32.mrb[138].mxu0 }
 0x2de   : > { %v6566_v29 = vpop.f32.mrb[139].mxu0  ;;  %5041 = vmatmul.mubr.bf16.vlgmr.msra.gmra.mrb[16].mxu1 %v6411_v1 }
 0x2df   : > { %5073 = vmatpush3.bf16.msra.mxu1 %v5581_v20  ;;  %5044 = vmatprep.mubr.bf16.mxu1 %v6425_v2  ;;  %v5587_v20 = vld [vmem:[%s6865_s2 + $0x230] sm:$0xff]  }
 0x2e0   : > { %5074 = vmatprep.subr.bf16.mxu1 %v5582_v27 }
 0x2e3   : > { %v6586_v63 = vpop.f32.mrb[108].mxu0  ;;  %5075 = vmatpush3.bf16.msra.mxu1 %v5582_v27 }
 0x2e4   : > { %v6588_v6 = vpop.f32.mrb[109].mxu0  ;;  %5076 = vmatprep.subr.bf16.mxu1 %v5583_v33 }
 0x2e5   : > { %v6593_v19 = vpop.f32.mrb[110].mxu0 }
 0x2e6   : > { %v6596_v46 = vpop.f32.mrb[111].mxu0  ;;  %5045 = vmatmul.mubr.bf16.gmra.mrb[20].mxu1 %v6429_v3 }
 0x2e7   : > { %5048 = vmatprep.mubr.bf16.mxu1 %v6443_v26  ;;  %5077 = vmatpush3.bf16.msra.mxu1 %v5583_v33 }
 0x2e8   : > { %5078 = vmatprep.subr.bf16.mxu1 %v5584_v4 }
 0x2eb   : > { %v6605_v52 = vpop.f32.mrb[112].mxu0  ;;  %5079 = vmatpush3.bf16.msra.mxu1 %v5584_v4 }
 0x2ec   : > { %v6607_v34 = vpop.f32.mrb[113].mxu0  ;;  %5080 = vmatprep.subr.bf16.mxu1 %v5585_v30 }
 0x2ed   : > { %v6612_v37 = vpop.f32.mrb[114].mxu0 }
 0x2ee   : > { %v6614_v55 = vpop.f32.mrb[115].mxu0  ;;  %5049 = vmatmul.mubr.bf16.gmra.mrb[24].mxu1 %v6447_v15 }
 0x2ef   : > { %5052 = vmatprep.mubr.bf16.mxu1 %v6461_v17  ;;  %5081 = vmatpush3.bf16.msra.mxu1 %v5585_v30 }
 0x2f0   : > { %5082 = vmatprep.subr.bf16.mxu1 %v5586_v39 }
 0x2f3   : > { %v6621_v43 = vpop.f32.mrb[116].mxu0  ;;  %5083 = vmatpush3.bf16.msra.mxu1 %v5586_v39 }
 0x2f4   : > { %v6623_v13 = vpop.f32.mrb[117].mxu0  ;;  %5084 = vmatprep.subr.bf16.mxu1 %v5587_v20 }
 0x2f5   : > { %v6628_v24 = vpop.f32.mrb[118].mxu0 }
 0x2f6   : > { %v6630_v7 = vpop.f32.mrb[119].mxu0  ;;  %5053 = vmatmul.mubr.bf16.gmra.mrb[28].mxu1 %v6465_v41 }
 0x2f7   : > { %5056 = vmatprep.mubr.bf16.mxu1 %v6476_v62  ;;  %5085 = vmatpush3.bf16.msra.mxu1 %v5587_v20 }
 0x2f8   : > { %5086 = vmatprep.subr.bf16.mxu1 %v5588_v54 }
 0x2fb   : > { %v6634_v12 = vpop.f32.mrb[120].mxu0  ;;  %5087 = vmatpush3.bf16.msra.mxu1 %v5588_v54 }
 0x2fc   : > { %v6636_v21 = vpop.f32.mrb[121].mxu0  ;;  %5184 = vmatprep.subr.bf16.mxu1 %v6540_v23 }
 0x2fd   : > { %v6639_v16 = vpop.f32.mrb[122].mxu0 }
 0x2fe   : > { %v6641_v49 = vpop.f32.mrb[123].mxu0  ;;  %5057 = vmatmul.mubr.bf16.gmra.mrb[0].mxu1 %v6480_v48 }
 0x2ff   : > { %5060 = vmatprep.mubr.bf16.mxu1 %v6494_v44 }
 0x306   : > { %5061 = vmatmul.mubr.bf16.gmra.mrb[4].mxu1 %v6500_v11 }
 0x307   : > { %5064 = vmatprep.mubr.bf16.mxu1 %v6514_v59 }
 0x30e   : > { %5065 = vmatmul.mubr.bf16.gmra.mrb[8].mxu1 %v6520_v5 }
 0x30f   : > { %5068 = vmatprep.mubr.bf16.mxu1 %v6532_v28 }
 0x316   : > { %5069 = vmatmul.mubr.bf16.gmra.mrb[12].mxu1 %v6092_v9 }
 0x317   : > { %5088 = vmatprep.mubr.bf16.mxu1 %v6411_v1  ;;  %v6903_v1 = vld [vmem:[#allocation34_spill] sm:$0xff] }
 0x31e   : > { %5089 = vmatmul.mubr.bf16.vlgmr.msra.gmra.mrb[16].mxu1 %v6425_v2  ;;  %v5594_v2 = vld [vmem:[%s6867_s4 + $0x28] sm:$0xff]  }
 0x31f   : > { %5092 = vmatprep.mubr.bf16.mxu1 %v6429_v3  ;;  %5192 = vmatpush3.bf16.msra.mxu1 %v6540_v23  ;;  %v5595_v3 = vld [vmem:[%s6867_s4 + $0x30] sm:$0xff]  }
 0x320   : > { %5185 = vmatprep.subr.bf16.mxu1 %v6545_v36  ;;  %5130 = vmatprep.subr.bf16.mxu0 %v5594_v2 }
 0x321   : > { %5131 = vmatpush3.bf16.msra.mxu0 %v5594_v2 }
 0x322   : > { %5132 = vmatprep.subr.bf16.mxu0 %v5595_v3 }
 0x323   : > { %5193 = vmatpush3.bf16.msra.mxu1 %v6545_v36 }
 0x324   : > { %5186 = vmatprep.subr.bf16.mxu1 %v6554_v22 }
 0x325   : > { %5133 = vmatpush3.bf16.msra.mxu0 %v5595_v3 }
 0x326   : > { %5093 = vmatmul.mubr.bf16.gmra.mrb[20].mxu1 %v6443_v26 }
 0x327   : > { %5096 = vmatprep.mubr.bf16.mxu1 %v6447_v15  ;;  %5194 = vmatpush3.bf16.msra.mxu1 %v6554_v22  ;;  %v6687_v15 = vld [vmem:[%s6866_s3] ss:$0 sm:$0xff] }
 0x328   : > { %5187 = vmatprep.subr.bf16.mxu1 %v6573_v25 }
 0x32b   : > { %5195 = vmatpush3.bf16.msra.mxu1 %v6573_v25 }
 0x32c   : > { %5188 = vmatprep.subr.bf16.mxu1 %v6584_v42 }
 0x32e   : > { %5097 = vmatmul.mubr.bf16.gmra.mrb[24].mxu1 %v6461_v17 }
 0x32f   : > { %5100 = vmatprep.mubr.bf16.mxu1 %v6465_v41  ;;  %5196 = vmatpush3.bf16.msra.mxu1 %v6584_v42 }
 0x330   : > { %5189 = vmatprep.subr.bf16.mxu1 %v5594_v2 }
 0x333   : > { %5197 = vmatpush3.bf16.msra.mxu1 %v5594_v2 }
 0x334   : > { %5190 = vmatprep.subr.bf16.mxu1 %v5595_v3 }
 0x336   : > { %5101 = vmatmul.mubr.bf16.gmra.mrb[28].mxu1 %v6476_v62 }
 0x337   : > { %5104 = vmatprep.mubr.bf16.mxu1 %v6480_v48  ;;  %5198 = vmatpush3.bf16.msra.mxu1 %v5595_v3 }
 0x33e   : > { %5105 = vmatmul.mubr.bf16.gmra.mrb[0].mxu1 %v6494_v44 }
 0x33f   : > { %5108 = vmatprep.mubr.bf16.mxu1 %v6500_v11 }
 0x346   : > { %5109 = vmatmul.mubr.bf16.gmra.mrb[4].mxu1 %v6514_v59 }
 0x347   : > { %5112 = vmatprep.mubr.bf16.mxu1 %v6520_v5 }
 0x34e   : > { %5113 = vmatmul.mubr.bf16.gmra.mrb[8].mxu1 %v6532_v28 }
 0x34f   : > { %5116 = vmatprep.mubr.bf16.mxu1 %v6092_v9  ;;  %v5596_v9 = vld [vmem:[%s6867_s4 + $0x38] sm:$0xff]  }
 0x350   : > { %5134 = vmatprep.subr.bf16.mxu0 %v5596_v9  ;;  %5191 = vmatprep.subr.bf16.mxu1 %v5596_v9 }
 0x351   : > { %5135 = vmatpush3.bf16.msra.mxu0 %v5596_v9  ;;  %5199 = vmatpush3.bf16.msra.mxu1 %v5596_v9 }
 0x356   : > { %5117 = vmatmul.mubr.bf16.gmra.mrb[12].mxu1 %v6903_v1 }
 0x3f1   : > { %v5090_v26 = vpop.f32.mrb[16].mxu1 }
 0x3f2   : > { %v5200_v17 = vadd.f32 %v5090_v26, %v6586_v63  ;;  %v3394_v41 = vpop.f32.mrb[17].mxu1 }
 0x3f3   : > { %v5201_v62 = vadd.f32 %v3394_v41, %v6588_v6  ;;  %v5091_v48 = vpop.f32.mrb[18].mxu1 }
 0x3f4   : > { %v3562_v44 = vadd.f32 %v5200_v17, %v6687_v15  ;;  %v5202_v11 = vadd.f32 %v5091_v48, %v6593_v19  ;;  %v3397_v50 = vpop.f32.mrb[19].mxu1 }
 0x3f5   : > { %v3560_v31 = vadd.f32 %v5201_v62, %v6687_v15  ;;  %v5203_v40 = vadd.f32 %v3397_v50, %v6596_v46 }
 0x3f6   : > { %v3563_v59 = vadd.f32 %v5202_v11, %v6687_v15  ;;  %v3594_v61 = vmax.f32 %v3562_v44, 0.0 }
 0x3f7   : > { %v3561_v5 = vadd.f32 %v5203_v40, %v6687_v15  ;;  %v3592_v28 = vmax.f32 %v3560_v31, 0.0 }
 0x3f8   : > { %v3595_v32 = vmax.f32 %v3563_v59, 0.0 }
 0x3f9   : > { %v3593_v23 = vmax.f32 %v3561_v5, 0.0  ;;  %v5094_v36 = vpop.f32.mrb[20].mxu1 }
 0x3fa   : > { %v3625_v22 = vpack.c.bf16 %v3595_v32, %v3594_v61  ;;  %v5204_v27 = vadd.f32 %v5094_v36, %v6605_v52  ;;  %v3410_v25 = vpop.f32.mrb[21].mxu1 }
 0x3fb   : > { %v5205_v33 = vadd.f32 %v3410_v25, %v6607_v34  ;;  %v5095_v42 = vpop.f32.mrb[22].mxu1  ;;  %v3624_v63 = vpack.c.bf16 %v3593_v23, %v3592_v28 }
 0x3fc   : > { %v3566_v6 = vadd.f32 %v5204_v27, %v6687_v15  ;;  %v5206_v4 = vadd.f32 %v5095_v42, %v6612_v37  ;;  %v3413_v19 = vpop.f32.mrb[23].mxu1 }
 0x3fd   : > { %v3564_v46 = vadd.f32 %v5205_v33, %v6687_v15  ;;  %v5207_v30 = vadd.f32 %v3413_v19, %v6614_v55  ;;  %5136 = vmatprep.mubr.bf16.mxu0 %v3624_v63 }
 0x3fe   : > { %v3567_v39 = vadd.f32 %v5206_v4, %v6687_v15  ;;  %5137 = vmatmul.mubr.bf16.vlgmr.msra.gmra.mrb[140].mxu0 %v3625_v22  ;;  %v3598_v20 = vmax.f32 %v3566_v6, 0.0 }
 0x3ff   : > { %v3565_v52 = vadd.f32 %v5207_v30, %v6687_v15  ;;  %v3596_v34 = vmax.f32 %v3564_v46, 0.0 }
 0x400   : > { %v3599_v54 = vmax.f32 %v3567_v39, 0.0 }
 0x401   : > { %v3597_v1 = vmax.f32 %v3565_v52, 0.0  ;;  %v5098_v2 = vpop.f32.mrb[24].mxu1 }
 0x402   : > { %v5208_v3 = vadd.f32 %v5098_v2, %v6621_v43  ;;  %v3426_v9 = vpop.f32.mrb[25].mxu1  ;;  %v3627_v37 = vpack.c.bf16 %v3599_v54, %v3598_v20 }
 0x403   : > { %v5209_v26 = vadd.f32 %v3426_v9, %v6623_v13  ;;  %v5099_v17 = vpop.f32.mrb[26].mxu1  ;;  %v3626_v41 = vpack.c.bf16 %v3597_v1, %v3596_v34 }
 0x404   : > { %v3570_v55 = vadd.f32 %v5208_v3, %v6687_v15  ;;  %v5210_v62 = vadd.f32 %v5099_v17, %v6628_v24  ;;  %v3429_v48 = vpop.f32.mrb[27].mxu1 }
 0x405   : > { %v3568_v44 = vadd.f32 %v5209_v26, %v6687_v15  ;;  %v5211_v11 = vadd.f32 %v3429_v48, %v6630_v7  ;;  %5140 = vmatprep.mubr.bf16.mxu0 %v3626_v41 }
 0x406   : > { %v3571_v50 = vadd.f32 %v5210_v62, %v6687_v15  ;;  %5141 = vmatmul.mubr.bf16.gmra.mrb[144].mxu0 %v3627_v37  ;;  %v3602_v31 = vmax.f32 %v3570_v55, 0.0 }
 0x407   : > { %v3569_v43 = vadd.f32 %v5211_v11, %v6687_v15  ;;  %v3600_v13 = vmax.f32 %v3568_v44, 0.0 }
 0x408   : > { %v3603_v40 = vmax.f32 %v3571_v50, 0.0 }
 0x409   : > { %v3601_v59 = vmax.f32 %v3569_v43, 0.0  ;;  %v5102_v5 = vpop.f32.mrb[28].mxu1 }
 0x40a   : > { %v5212_v61 = vadd.f32 %v5102_v5, %v6634_v12  ;;  %v3442_v32 = vpop.f32.mrb[29].mxu1  ;;  %v3629_v24 = vpack.c.bf16 %v3603_v40, %v3602_v31 }
 0x40b   : > { %v5213_v28 = vadd.f32 %v3442_v32, %v6636_v21  ;;  %v5103_v23 = vpop.f32.mrb[30].mxu1  ;;  %v3628_v36 = vpack.c.bf16 %v3601_v59, %v3600_v13 }
 0x40c   : > { %v3574_v7 = vadd.f32 %v5212_v61, %v6687_v15  ;;  %v5214_v22 = vadd.f32 %v5103_v23, %v6639_v16  ;;  %v3445_v27 = vpop.f32.mrb[31].mxu1 }
 0x40d   : > { %v3572_v25 = vadd.f32 %v5213_v28, %v6687_v15  ;;  %v5215_v33 = vadd.f32 %v3445_v27, %v6641_v49  ;;  %5144 = vmatprep.mubr.bf16.mxu0 %v3628_v36 }
 0x40e   : > { %v3575_v42 = vadd.f32 %v5214_v22, %v6687_v15  ;;  %5145 = vmatmul.mubr.bf16.gmra.mrb[148].mxu0 %v3629_v24  ;;  %v3606_v63 = vmax.f32 %v3574_v7, 0.0 }
 0x40f   : > { %v3573_v12 = vadd.f32 %v5215_v33, %v6687_v15  ;;  %v3604_v21 = vmax.f32 %v3572_v25, 0.0 }
 0x410   : > { %v3607_v6 = vmax.f32 %v3575_v42, 0.0 }
 0x411   : > { %v3605_v4 = vmax.f32 %v3573_v12, 0.0  ;;  %v5106_v19 = vpop.f32.mrb[0].mxu1 }
 0x412   : > { %v5216_v46 = vadd.f32 %v5106_v19, %v6485_v8  ;;  %v3458_v30 = vpop.f32.mrb[1].mxu1  ;;  %v3631_v16 = vpack.c.bf16 %v3607_v6, %v3606_v63 }
 0x413   : > { %v5217_v39 = vadd.f32 %v3458_v30, %v6488_v60  ;;  %v5107_v52 = vpop.f32.mrb[2].mxu1  ;;  %v3630_v20 = vpack.c.bf16 %v3605_v4, %v3604_v21 }
 0x414   : > { %v3578_v49 = vadd.f32 %v5216_v46, %v6687_v15  ;;  %v5218_v54 = vadd.f32 %v5107_v52, %v6491_v35  ;;  %v3461_v34 = vpop.f32.mrb[3].mxu1 }
 0x415   : > { %v3576_v1 = vadd.f32 %v5217_v39, %v6687_v15  ;;  %v5219_v2 = vadd.f32 %v3461_v34, %v6496_v53  ;;  %5148 = vmatprep.mubr.bf16.mxu0 %v3630_v20 }
 0x416   : > { %v3579_v3 = vadd.f32 %v5218_v54, %v6687_v15  ;;  %5149 = vmatmul.mubr.bf16.gmra.mrb[152].mxu0 %v3631_v16  ;;  %v3610_v9 = vmax.f32 %v3578_v49, 0.0 }
 0x417   : > { %v3577_v8 = vadd.f32 %v5219_v2, %v6687_v15  ;;  %v3608_v60 = vmax.f32 %v3576_v1, 0.0 }
 0x418   : > { %v3611_v37 = vmax.f32 %v3579_v3, 0.0 }
 0x419   : > { %v3609_v26 = vmax.f32 %v3577_v8, 0.0  ;;  %v5110_v17 = vpop.f32.mrb[4].mxu1 }
 0x41a   : > { %v5220_v41 = vadd.f32 %v5110_v17, %v6505_v51  ;;  %v3474_v55 = vpop.f32.mrb[5].mxu1  ;;  %v3633_v35 = vpack.c.bf16 %v3611_v37, %v3610_v9 }
 0x41b   : > { %v5221_v62 = vadd.f32 %v3474_v55, %v6508_v45  ;;  %v5111_v48 = vpop.f32.mrb[6].mxu1  ;;  %v3632_v44 = vpack.c.bf16 %v3609_v26, %v3608_v60  ;;  %v6904_v60 = vld [vmem:[#allocation4_spill] sm:$0xff]  ;;  %v6905_v55 = vld [vmem:[#allocation2_spill] sm:$0xff] }
 0x41c   : > { %v3582_v53 = vadd.f32 %v5220_v41, %v6687_v15  ;;  %v5222_v11 = vadd.f32 %v5111_v48, %v6511_v0  ;;  %v3477_v50 = vpop.f32.mrb[7].mxu1 }
 0x41d   : > { %v3580_v43 = vadd.f32 %v5221_v62, %v6687_v15  ;;  %v5223_v31 = vadd.f32 %v3477_v50, %v6516_v38  ;;  %5152 = vmatprep.mubr.bf16.mxu0 %v3632_v44  ;;  %v6906_v44 = vld [vmem:[#allocation5_spill] sm:$0xff]  ;;  %v6907_v50 = vld [vmem:[#allocation3_spill] sm:$0xff] }
 0x41e   : > { %v3583_v40 = vadd.f32 %v5222_v11, %v6687_v15  ;;  %5153 = vmatmul.mubr.bf16.gmra.mrb[156].mxu0 %v3633_v35  ;;  %v3614_v13 = vmax.f32 %v3582_v53, 0.0 }
 0x41f   : > { %v3581_v51 = vadd.f32 %v5223_v31, %v6687_v15  ;;  %v3612_v45 = vmax.f32 %v3580_v43, 0.0 }
 0x420   : > { %v3615_v59 = vmax.f32 %v3583_v40, 0.0 }
 0x421   : > { %v3613_v5 = vmax.f32 %v3581_v51, 0.0  ;;  %v5114_v61 = vpop.f32.mrb[8].mxu1 }
 0x422   : > { %v5224_v32 = vadd.f32 %v5114_v61, %v6524_v56  ;;  %v3490_v24 = vpop.f32.mrb[9].mxu1  ;;  %v3635_v0 = vpack.c.bf16 %v3615_v59, %v3614_v13  ;;  %v6908_v61 = vld [vmem:[#allocation8_spill] sm:$0xff] }
 0x423   : > { %v5225_v28 = vadd.f32 %v3490_v24, %v6527_v57  ;;  %v5115_v23 = vpop.f32.mrb[10].mxu1  ;;  %v3634_v36 = vpack.c.bf16 %v3613_v5, %v3612_v45 }
 0x424   : > { %v3586_v38 = vadd.f32 %v5224_v32, %v6687_v15  ;;  %v5226_v7 = vadd.f32 %v5115_v23, %v6529_v58  ;;  %v3493_v22 = vpop.f32.mrb[11].mxu1 }
 0x425   : > { %v3584_v27 = vadd.f32 %v5225_v28, %v6687_v15  ;;  %v5227_v25 = vadd.f32 %v3493_v22, %v6534_v10  ;;  %5156 = vmatprep.mubr.bf16.mxu0 %v3634_v36  ;;  %v6909_v28 = vld [vmem:[#allocation6_spill] sm:$0xff] }
 0x426   : > { %v3587_v33 = vadd.f32 %v5226_v7, %v6687_v15  ;;  %5157 = vmatmul.mubr.bf16.gmra.mrb[160].mxu0 %v3635_v0  ;;  %v3618_v42 = vmax.f32 %v3586_v38, 0.0  ;;  %v6910_v7 = vld [vmem:[#allocation9_spill] sm:$0xff] }
 0x427   : > { %v3585_v56 = vadd.f32 %v5227_v25, %v6687_v15  ;;  %v3616_v57 = vmax.f32 %v3584_v27, 0.0  ;;  %v6911_v25 = vld [vmem:[#allocation7_spill] sm:$0xff] }
 0x428   : > { %v3619_v12 = vmax.f32 %v3587_v33, 0.0 }
 0x429   : > { %v3617_v63 = vmax.f32 %v3585_v56, 0.0  ;;  %v5118_v6 = vpop.f32.mrb[12].mxu1 }
 0x42a   : > { %v5228_v21 = vadd.f32 %v5118_v6, %v6556_v14  ;;  %v3506_v4 = vpop.f32.mrb[13].mxu1  ;;  %v3637_v58 = vpack.c.bf16 %v3619_v12, %v3618_v42 }
 0x42b   : > { %v5229_v19 = vadd.f32 %v3506_v4, %v6558_v18  ;;  %v5119_v46 = vpop.f32.mrb[14].mxu1  ;;  %v3636_v30 = vpack.c.bf16 %v3617_v63, %v3616_v57  ;;  %v6912_v4 = vld [vmem:[#allocation12_spill] sm:$0xff] }
 0x42c   : > { %v3590_v10 = vadd.f32 %v5228_v21, %v6687_v15  ;;  %v5230_v16 = vadd.f32 %v5119_v46, %v6563_v47  ;;  %v3509_v39 = vpop.f32.mrb[15].mxu1  ;;  %v6756_v47 = vld [vmem:[%s6868_s5] ss:$0 sm:$0xff] }
 0x42d   : > { %v3588_v52 = vadd.f32 %v5229_v19, %v6687_v15  ;;  %v5231_v20 = vadd.f32 %v3509_v39, %v6566_v29  ;;  %5160 = vmatprep.mubr.bf16.mxu0 %v3636_v30  ;;  %v6913_v30 = vld [vmem:[#allocation10_spill] sm:$0xff] }
 0x42e   : > { %v3591_v49 = vadd.f32 %v5230_v16, %v6687_v15  ;;  %5161 = vmatmul.mubr.bf16.gmra.mrb[164].mxu0 %v3637_v58  ;;  %v3622_v54 = vmax.f32 %v3590_v10, 0.0 }
 0x42f   : > { %v3589_v14 = vadd.f32 %v5231_v20, %v6687_v15  ;;  %v3620_v34 = vmax.f32 %v3588_v52, 0.0  ;;  %v6914_v52 = vld [vmem:[#allocation13_spill] sm:$0xff] }
 0x430   : > { %v3623_v18 = vmax.f32 %v3591_v49, 0.0 }
 0x431   : > { %v3621_v1 = vmax.f32 %v3589_v14, 0.0  ;;  %v6915_v14 = vld [vmem:[#allocation11_spill] sm:$0xff] }
 0x432   : > { %v3639_v2 = vpack.c.bf16 %v3623_v18, %v3622_v54 }
 0x433   : > { %v3638_v3 = vpack.c.bf16 %v3621_v1, %v3620_v34 }
 0x435   : > { %5164 = vmatprep.mubr.bf16.mxu1 %v3638_v3 }
 0x436   : > { %5165 = vmatmul.mubr.bf16.vlgmr.msra.gmra.mrb[32].mxu1 %v3639_v2 }
 0x4d1   : > { %v5138_v29 = vpop.f32.mrb[140].mxu0 }
 0x4d2   : > { %v3754_v8 = vadd.f32 %v5138_v29, %v6756_v47  ;;  %v3745_v9 = vpop.f32.mrb[141].mxu0 }
 0x4d3   : > { %v3746_v15 = vadd.f32 %v6756_v47, %v3745_v9  ;;  %v5139_v37 = vpop.f32.mrb[142].mxu0  ;;  %v6916_v9 = vld [vmem:[#allocation16_spill] sm:$0xff] }
 0x4d4   : > { %v4035_v26 = vadd.f32 %v6904_v60, %v3754_v8  ;;  %v3757_v17 = vadd.f32 %v5139_v37, %v6756_v47  ;;  %v3748_v41 = vpop.f32.mrb[143].mxu0 }
 0x4d5   : > { %v4033_v35 = vadd.f32 %v6905_v55, %v3746_v15  ;;  %v3749_v62 = vadd.f32 %v6756_v47, %v3748_v41 }
 0x4d6   : > { %v4067_v48 = vmax.f32 %v4035_v26, 0.0  ;;  %v4036_v53 = vadd.f32 %v6906_v44, %v3757_v17  ;;  %v6917_v26 = vld [vmem:[#allocation14_spill] sm:$0xff]  ;;  %v6919_v44 = vld [vmem:[#allocation15_spill] sm:$0xff] }
 0x4d7   : > { %v4065_v11 = vmax.f32 %v4033_v35, 0.0  ;;  %v4034_v43 = vadd.f32 %v6907_v50, %v3749_v62  ;;  %v6918_v35 = vld [vmem:[#allocation17_spill] sm:$0xff] }
 0x4d8   : > { %4099 = vst [vmem:[%s6766_s29 + $0x10] sm:$0xff] %v4067_v48  ;;  %v4068_v31 = vmax.f32 %v4036_v53, 0.0 }
 0x4d9   : > { %4097 = vst [vmem:[%s6766_s29] sm:$0xff] %v4065_v11  ;;  %v4066_v40 = vmax.f32 %v4034_v43, 0.0  ;;  %v5142_v51 = vpop.f32.mrb[144].mxu0 }
 0x4da   : > { %4100 = vst [vmem:[%s6766_s29 + $0x18] sm:$0xff] %v4068_v31  ;;  %v3770_v13 = vadd.f32 %v5142_v51, %v6756_v47  ;;  %v3761_v59 = vpop.f32.mrb[145].mxu0 }
 0x4db   : > { %4098 = vst [vmem:[%s6766_s29 + $0x8] sm:$0xff] %v4066_v40  ;;  %v3762_v45 = vadd.f32 %v6756_v47, %v3761_v59  ;;  %v5143_v5 = vpop.f32.mrb[146].mxu0  ;;  %v6920_v59 = vld [vmem:[#allocation20_spill] sm:$0xff] }
 0x4dc   : > { %v4039_v32 = vadd.f32 %v6908_v61, %v3770_v13  ;;  %v3773_v24 = vadd.f32 %v5143_v5, %v6756_v47  ;;  %v3764_v0 = vpop.f32.mrb[147].mxu0 }
 0x4dd   : > { %v4037_v23 = vadd.f32 %v6909_v28, %v3762_v45  ;;  %v3765_v36 = vadd.f32 %v6756_v47, %v3764_v0 }
 0x4de   : > { %v4071_v38 = vmax.f32 %v4039_v32, 0.0  ;;  %v4040_v22 = vadd.f32 %v6910_v7, %v3773_v24  ;;  %v6921_v32 = vld [vmem:[#allocation18_spill] sm:$0xff]  ;;  %v6923_v7 = vld [vmem:[#allocation19_spill] sm:$0xff] }
 0x4df   : > { %v4069_v27 = vmax.f32 %v4037_v23, 0.0  ;;  %v4038_v33 = vadd.f32 %v6911_v25, %v3765_v36  ;;  %v6922_v23 = vld [vmem:[#allocation21_spill] sm:$0xff] }
 0x4e0   : > { %4103 = vst [vmem:[%s6766_s29 + $0x30] sm:$0xff] %v4071_v38  ;;  %v4072_v56 = vmax.f32 %v4040_v22, 0.0 }
 0x4e1   : > { %4101 = vst [vmem:[%s6766_s29 + $0x20] sm:$0xff] %v4069_v27  ;;  %v4070_v42 = vmax.f32 %v4038_v33, 0.0  ;;  %v5146_v12 = vpop.f32.mrb[148].mxu0 }
 0x4e2   : > { %4104 = vst [vmem:[%s6766_s29 + $0x38] sm:$0xff] %v4072_v56  ;;  %v3786_v57 = vadd.f32 %v5146_v12, %v6756_v47  ;;  %v3777_v63 = vpop.f32.mrb[149].mxu0 }
 0x4e3   : > { %4102 = vst [vmem:[%s6766_s29 + $0x28] sm:$0xff] %v4070_v42  ;;  %v3778_v6 = vadd.f32 %v6756_v47, %v3777_v63  ;;  %v5147_v21 = vpop.f32.mrb[150].mxu0  ;;  %v6924_v63 = vld [vmem:[#allocation24_spill] sm:$0xff] }
 0x4e4   : > { %v4043_v58 = vadd.f32 %v6912_v4, %v3786_v57  ;;  %v3789_v19 = vadd.f32 %v5147_v21, %v6756_v47  ;;  %v3780_v46 = vpop.f32.mrb[151].mxu0 }
 0x4e5   : > { %v4041_v10 = vadd.f32 %v6913_v30, %v3778_v6  ;;  %v3781_v16 = vadd.f32 %v6756_v47, %v3780_v46 }
 0x4e6   : > { %v4075_v39 = vmax.f32 %v4043_v58, 0.0  ;;  %v4044_v20 = vadd.f32 %v6914_v52, %v3789_v19  ;;  %v6925_v58 = vld [vmem:[#allocation22_spill] sm:$0xff]  ;;  %v6927_v52 = vld [vmem:[#allocation23_spill] sm:$0xff] }
 0x4e7   : > { %v4073_v49 = vmax.f32 %v4041_v10, 0.0  ;;  %v4042_v54 = vadd.f32 %v6915_v14, %v3781_v16  ;;  %v6926_v10 = vld [vmem:[#allocation25_spill] sm:$0xff] }
 0x4e8   : > { %4107 = vst [vmem:[%s6766_s29 + $0x50] sm:$0xff] %v4075_v39  ;;  %v4076_v18 = vmax.f32 %v4044_v20, 0.0 }
 0x4e9   : > { %4105 = vst [vmem:[%s6766_s29 + $0x40] sm:$0xff] %v4073_v49  ;;  %v4074_v34 = vmax.f32 %v4042_v54, 0.0  ;;  %v5150_v1 = vpop.f32.mrb[152].mxu0 }
 0x4ea   : > { %4108 = vst [vmem:[%s6766_s29 + $0x58] sm:$0xff] %v4076_v18  ;;  %v3802_v2 = vadd.f32 %v5150_v1, %v6756_v47  ;;  %v3793_v3 = vpop.f32.mrb[153].mxu0 }
 0x4eb   : > { %4106 = vst [vmem:[%s6766_s29 + $0x48] sm:$0xff] %v4074_v34  ;;  %v3794_v29 = vadd.f32 %v6756_v47, %v3793_v3  ;;  %v5151_v8 = vpop.f32.mrb[154].mxu0  ;;  %v6928_v3 = vld [vmem:[#allocation28_spill] sm:$0xff] }
 0x4ec   : > { %v4047_v15 = vadd.f32 %v6916_v9, %v3802_v2  ;;  %v3805_v37 = vadd.f32 %v5151_v8, %v6756_v47  ;;  %v3796_v60 = vpop.f32.mrb[155].mxu0 }
 0x4ed   : > { %v4045_v17 = vadd.f32 %v6917_v26, %v3794_v29  ;;  %v3797_v41 = vadd.f32 %v6756_v47, %v3796_v60 }
 0x4ee   : > { %v4079_v55 = vmax.f32 %v4047_v15, 0.0  ;;  %v4048_v62 = vadd.f32 %v6918_v35, %v3805_v37  ;;  %v6929_v15 = vld [vmem:[#allocation26_spill] sm:$0xff]  ;;  %v6931_v35 = vld [vmem:[#allocation27_spill] sm:$0xff] }
 0x4ef   : > { %v4077_v48 = vmax.f32 %v4045_v17, 0.0  ;;  %v4046_v53 = vadd.f32 %v6919_v44, %v3797_v41  ;;  %v6930_v17 = vld [vmem:[#allocation29_spill] sm:$0xff] }
 0x4f0   : > { %4111 = vst [vmem:[%s6766_s29 + $0x70] sm:$0xff] %v4079_v55  ;;  %v4080_v11 = vmax.f32 %v4048_v62, 0.0 }
 0x4f1   : > { %4109 = vst [vmem:[%s6766_s29 + $0x60] sm:$0xff] %v4077_v48  ;;  %v4078_v50 = vmax.f32 %v4046_v53, 0.0  ;;  %v5154_v43 = vpop.f32.mrb[156].mxu0 }
 0x4f2   : > { %4112 = vst [vmem:[%s6766_s29 + $0x78] sm:$0xff] %v4080_v11  ;;  %v3818_v31 = vadd.f32 %v5154_v43, %v6756_v47  ;;  %v3809_v40 = vpop.f32.mrb[157].mxu0 }
 0x4f3   : > { %4110 = vst [vmem:[%s6766_s29 + $0x68] sm:$0xff] %v4078_v50  ;;  %v3810_v51 = vadd.f32 %v6756_v47, %v3809_v40  ;;  %v5155_v13 = vpop.f32.mrb[158].mxu0  ;;  %v6932_v40 = vld [vmem:[#allocation32_spill] sm:$0xff] }
 0x4f4   : > { %v4051_v45 = vadd.f32 %v6920_v59, %v3818_v31  ;;  %v3821_v5 = vadd.f32 %v5155_v13, %v6756_v47  ;;  %v3812_v61 = vpop.f32.mrb[159].mxu0 }
 0x4f5   : > { %v4049_v24 = vadd.f32 %v6921_v32, %v3810_v51  ;;  %v3813_v0 = vadd.f32 %v6756_v47, %v3812_v61 }
 0x4f6   : > { %v4083_v28 = vmax.f32 %v4051_v45, 0.0  ;;  %v4052_v36 = vadd.f32 %v6922_v23, %v3821_v5  ;;  %v6933_v45 = vld [vmem:[#allocation30_spill] sm:$0xff]  ;;  %v6935_v23 = vld [vmem:[#allocation31_spill] sm:$0xff] }
 0x4f7   : > { %v4081_v38 = vmax.f32 %v4049_v24, 0.0  ;;  %v4050_v22 = vadd.f32 %v6923_v7, %v3813_v0  ;;  %v6934_v24 = vld [vmem:[#allocation33_spill] sm:$0xff] }
 0x4f8   : > { %4115 = vst [vmem:[%s6766_s29 + $0x90] sm:$0xff] %v4083_v28  ;;  %v4084_v27 = vmax.f32 %v4052_v36, 0.0 }
 0x4f9   : > { %4113 = vst [vmem:[%s6766_s29 + $0x80] sm:$0xff] %v4081_v38  ;;  %v4082_v25 = vmax.f32 %v4050_v22, 0.0  ;;  %v5158_v33 = vpop.f32.mrb[160].mxu0 }
 0x4fa   : > { %4116 = vst [vmem:[%s6766_s29 + $0x98] sm:$0xff] %v4084_v27  ;;  %v3834_v56 = vadd.f32 %v5158_v33, %v6756_v47  ;;  %v3825_v42 = vpop.f32.mrb[161].mxu0 }
 0x4fb   : > { %4114 = vst [vmem:[%s6766_s29 + $0x88] sm:$0xff] %v4082_v25  ;;  %v3826_v12 = vadd.f32 %v6756_v47, %v3825_v42  ;;  %v5159_v57 = vpop.f32.mrb[162].mxu0 }
 0x4fc   : > { %v4055_v6 = vadd.f32 %v6924_v63, %v3834_v56  ;;  %v3837_v21 = vadd.f32 %v5159_v57, %v6756_v47  ;;  %v3828_v4 = vpop.f32.mrb[163].mxu0 }
 0x4fd   : > { %v4053_v19 = vadd.f32 %v6925_v58, %v3826_v12  ;;  %v3829_v46 = vadd.f32 %v6756_v47, %v3828_v4 }
 0x4fe   : > { %v4087_v30 = vmax.f32 %v4055_v6, 0.0  ;;  %v4056_v16 = vadd.f32 %v6926_v10, %v3837_v21 }
 0x4ff   : > { %v4085_v39 = vmax.f32 %v4053_v19, 0.0  ;;  %v4054_v20 = vadd.f32 %v6927_v52, %v3829_v46 }
 0x500   : > { %4119 = vst [vmem:[%s6766_s29 + $0xb0] sm:$0xff] %v4087_v30  ;;  %v4088_v49 = vmax.f32 %v4056_v16, 0.0 }
 0x501   : > { %4117 = vst [vmem:[%s6766_s29 + $0xa0] sm:$0xff] %v4085_v39  ;;  %v4086_v14 = vmax.f32 %v4054_v20, 0.0  ;;  %v5162_v54 = vpop.f32.mrb[164].mxu0 }
 0x502   : > { %4120 = vst [vmem:[%s6766_s29 + $0xb8] sm:$0xff] %v4088_v49  ;;  %v3850_v18 = vadd.f32 %v5162_v54, %v6756_v47  ;;  %v3841_v34 = vpop.f32.mrb[165].mxu0 }
 0x503   : > { %4118 = vst [vmem:[%s6766_s29 + $0xa8] sm:$0xff] %v4086_v14  ;;  %v3842_v1 = vadd.f32 %v6756_v47, %v3841_v34  ;;  %v5163_v2 = vpop.f32.mrb[166].mxu0 }
 0x504   : > { %v4059_v29 = vadd.f32 %v6928_v3, %v3850_v18  ;;  %v3853_v8 = vadd.f32 %v5163_v2, %v6756_v47  ;;  %v3844_v9 = vpop.f32.mrb[167].mxu0 }
 0x505   : > { %v4057_v37 = vadd.f32 %v6929_v15, %v3842_v1  ;;  %v3845_v60 = vadd.f32 %v6756_v47, %v3844_v9 }
 0x506   : > { %v4091_v26 = vmax.f32 %v4059_v29, 0.0  ;;  %v4060_v41 = vadd.f32 %v6930_v17, %v3853_v8 }
 0x507   : > { %v4089_v55 = vmax.f32 %v4057_v37, 0.0  ;;  %v4058_v62 = vadd.f32 %v6931_v35, %v3845_v60 }
 0x508   : > { %4123 = vst [vmem:[%s6766_s29 + $0xd0] sm:$0xff] %v4091_v26  ;;  %v4092_v48 = vmax.f32 %v4060_v41, 0.0 }
 0x509   : > { %4121 = vst [vmem:[%s6766_s29 + $0xc0] sm:$0xff] %v4089_v55  ;;  %v4090_v44 = vmax.f32 %v4058_v62, 0.0  ;;  %v5166_v53 = vpop.f32.mrb[32].mxu1 }
 0x50a   : > { %4124 = vst [vmem:[%s6766_s29 + $0xd8] sm:$0xff] %v4092_v48  ;;  %v3866_v11 = vadd.f32 %v5166_v53, %v6756_v47  ;;  %v3857_v50 = vpop.f32.mrb[33].mxu1 }
 0x50b   : > { %4122 = vst [vmem:[%s6766_s29 + $0xc8] sm:$0xff] %v4090_v44  ;;  %v3858_v43 = vadd.f32 %v6756_v47, %v3857_v50  ;;  %v5167_v31 = vpop.f32.mrb[34].mxu1 }
 0x50c   : > { %v4063_v51 = vadd.f32 %v6932_v40, %v3866_v11  ;;  %v3869_v13 = vadd.f32 %v5167_v31, %v6756_v47  ;;  %v3860_v59 = vpop.f32.mrb[35].mxu1 }
 0x50d   : > { %v4061_v5 = vadd.f32 %v6933_v45, %v3858_v43  ;;  %v3861_v61 = vadd.f32 %v6756_v47, %v3860_v59 }
 0x50e   : > { %v4095_v32 = vmax.f32 %v4063_v51, 0.0  ;;  %v4064_v0 = vadd.f32 %v6934_v24, %v3869_v13 }
 0x50f   : > { %v4093_v28 = vmax.f32 %v4061_v5, 0.0  ;;  %v4062_v36 = vadd.f32 %v6935_v23, %v3861_v61 }
 0x510   : > { %4127 = vst [vmem:[%s6766_s29 + $0xf0] sm:$0xff] %v4095_v32  ;;  %v4096_v38 = vmax.f32 %v4064_v0, 0.0 }
 0x511   : > { %4125 = vst [vmem:[%s6766_s29 + $0xe0] sm:$0xff] %v4093_v28  ;;  %v4094_v7 = vmax.f32 %v4062_v36, 0.0 }
 0x512   : > { %4128 = vst [vmem:[%s6766_s29 + $0xf8] sm:$0xff] %v4096_v38 }
 0x513   : > { %4126 = vst [vmem:[%s6766_s29 + $0xe8] sm:$0xff] %v4094_v7 }
 0x514 PF: > { %s16_s21 = sadd.s32 1, %s5603_s21  }
 0x515   : > { %p13_p4 = scmp.ge.s32.totalorder %s16_s21, 4  }
 0x517   :  { %15 = sbr.rel (!%p13_p4) target bundleno = 1 (0x1), region = 82 }

</bundles_post_ra>
